<compile_context>
chip_gen: v7x
topology: tpu7x:2x2x1
jax: 0.10.0
libtpu: 0.0.40
codegen_flags: <defaults>
</compile_context>

<pallas_src>
import functools

import jax
import jax.numpy as jnp
import numpy as np
from jax import lax
from jax.experimental import pallas as pl
from jax.experimental.pallas import tpu as pltpu


# ----------------------------------------------------------------------------
# Config (small, consistent with the module's __init__)
# ----------------------------------------------------------------------------
class Cfg:
    input_dim = 16        # vocab size for nn.Embedding
    emb_dim = 8
    condition_dim = 8
    hidden_dim = 32
    n_layers = 1
    bidirectional = True
    n_fc_layers = 2
    latent_dim = 16


# ----------------------------------------------------------------------------
# Single fused kernel
# ----------------------------------------------------------------------------
def _make_encoder_kernel(n_dir, n_fc):
    """Embedding (one-hot MXU gather) + x-projection + packed bi-LSTM recurrence
    + FC stack + fused mean|logvar head, emitting one (B, H+2L) output slab."""

    def kernel(mel_ref, cond_ref, table_ref, wcond_ref, whh_ref, bias_ref, *rest):
        fc_refs = [(rest[2 * i], rest[2 * i + 1]) for i in range(n_fc)]
        wml_ref, bml_ref = rest[2 * n_fc], rest[2 * n_fc + 1]
        out_ref = rest[2 * n_fc + 2]

        f32, bf16 = jnp.float32, jnp.bfloat16
        T, B, _ = cond_ref.shape                     # cond is time-major (T, B, C)
        V, Gp = table_ref.shape                      # Gp = 4 * n_dir * H
        nH = whh_ref.shape[0]                        # n_dir * H
        H = nH // n_dir

        mel = mel_ref[...]                           # (B, T) int32
        table = table_ref[...]                       # (V, Gp)  bf16  (= embedding @ W_ih[:E], packed cols)
        w_cond = wcond_ref[...]                      # (C, Gp)  bf16
        w_hh = whh_ref[...]                          # (nH, Gp) bf16, block-diagonal over directions
        bias = bias_ref[...]                         # (1, Gp)  f32   (b_ih + b_hh, packed cols)

        # ---- Hoisted x-projection (independent of h_{t-1}; schedules off the serial path).
        vocab_iota = lax.broadcasted_iota(jnp.int32, (B, V), 1)
        px = []
        for t in range(T):
            oh_t = jnp.where(vocab_iota == mel[:, t:t + 1], 1.0, 0.0).astype(bf16)   # (B, V)
            c_t = cond_ref[t].astype(bf16)                                           # (B, C)
            px.append(jnp.dot(oh_t, table, preferred_element_type=f32)
                      + jnp.dot(c_t, w_cond, preferred_element_type=f32)
                      + bias)                                                        # (B, Gp) f32

        # ---- Static lane masks for the packed layout (gate-major, direction-minor):
        #      columns = [i_f,i_b | f_f,f_b | g_f,g_b | o_f,o_b], each sub-block H lanes wide.
        col = lax.broadcasted_iota(jnp.int32, (B, Gp), 1)
        g_mask = (col >= 2 * nH) & (col < 3 * nH)                   # cell-gate lanes -> tanh
        bwd_parts = [(col >= g * nH + H) & (col < (g + 1) * nH) for g in range(4)]
        bwd_mask = bwd_parts[0] | bwd_parts[1] | bwd_parts[2] | bwd_parts[3]

        # ---- Packed bi-directional recurrence: ONE (B,nH)@(nH,Gp) bf16 MXU op per timestep.
        h = jnp.zeros((B, nH), f32)
        c = jnp.zeros((B, nH), f32)
        for t in range(T):
            # fwd-direction lanes read x_t, bwd-direction lanes read x_{T-1-t}
            gx_t = px[t] if n_dir == 1 else jnp.where(bwd_mask, px[T - 1 - t], px[t])
            gates = gx_t + jnp.dot(h.astype(bf16), w_hh, preferred_element_type=f32)
            act = jnp.where(g_mask, jnp.tanh(gates), jax.nn.sigmoid(gates))  # 2 EUP passes, not 4
            i_g = act[:, 0 * nH:1 * nH]
            f_g = act[:, 1 * nH:2 * nH]
            g_g = act[:, 2 * nH:3 * nH]
            o_g = act[:, 3 * nH:4 * nH]
            c = f_g * c + i_g * g_g
            h = o_g * jnp.tanh(c)
        # h == [h_fwd | h_bwd] in lanes -> exactly the FC-stack input; no in-kernel concat needed.

        hidden = h
        for w_ref, b_ref in fc_refs:                                 # Linear + ReLU stack
            hidden = jnp.maximum(
                jnp.dot(hidden.astype(bf16), w_ref[...], preferred_element_type=f32) + b_ref[...],
                0.0)

        ml = jnp.dot(hidden.astype(bf16), wml_ref[...], preferred_element_type=f32) + bml_ref[...]
        out_ref[...] = jnp.concatenate([hidden, ml], axis=-1)        # single lane-dense (B, H+2L) store

    return kernel


# ----------------------------------------------------------------------------
# Encoder forward (one Pallas kernel; only glue is a tiny time-major transpose of `condition`)
# ----------------------------------------------------------------------------
def encoder_forward(packed, melody, condition, cfg):
    B, T = melody.shape
    C = condition.shape[-1]
    H, L = cfg.hidden_dim, cfg.latent_dim
    n_dir = 2 if cfg.bidirectional else 1
    nH, Gp = n_dir * H, 4 * n_dir * H
    V = packed["gx_table"].shape[0]

    cond_tm = jnp.swapaxes(condition.astype(jnp.float32), 0, 1)      # (T, B, C), ~512 B

    operands = [melody.astype(jnp.int32), cond_tm,
                packed["gx_table"], packed["w_cond"], packed["w_hh"], packed["b"]]
    for w, b in zip(packed["fc_w"], packed["fc_b"]):
        operands += [w, b]
    operands += [packed["w_ml"], packed["b_ml"]]

    flops = int(2 * T * B * (V + C) * Gp          # x-projection (one-hot + condition) matmuls
                + 2 * T * B * nH * Gp             # packed recurrent matmuls
                + 2 * B * nH * H                  # fc[0]
                + 2 * B * H * H * max(cfg.n_fc_layers - 1, 0)
                + 2 * B * H * 2 * L)              # fused mean|logvar head
    transcendentals = int(T * (2 * B * Gp + B * nH))
    bytes_accessed = int(sum(int(np.prod(x.shape)) * x.dtype.itemsize for x in operands)
                         + B * (H + 2 * L) * 4)

    out = pl.pallas_call(
        _make_encoder_kernel(n_dir, cfg.n_fc_layers),
        out_shape=jax.ShapeDtypeStruct((B, H + 2 * L), jnp.float32),
        in_specs=[pl.BlockSpec(memory_space=pltpu.MemorySpace.VMEM)] * len(operands),
        out_specs=pl.BlockSpec(memory_space=pltpu.MemorySpace.VMEM),
        cost_estimate=pl.CostEstimate(flops=flops, transcendentals=transcendentals,
                                      bytes_accessed=bytes_accessed),
    )(*operands)

    hidden = out[:, :H]
    mean = out[:, H:H + L]
    logvar = out[:, H + L:]
    return hidden, mean, logvar


# ----------------------------------------------------------------------------
# Parameter construction (deterministic, PyTorch-like init) and kernel-side packing
# ----------------------------------------------------------------------------
def init_params(cfg, key):
    H, E, C, L, V = cfg.hidden_dim, cfg.emb_dim, cfg.condition_dim, cfg.latent_dim, cfg.input_dim
    D = E + C
    n_dir = 2 if cfg.bidirectional else 1
    ks = iter(jax.random.split(key, 64))

    def unif(shape, b):
        return jax.random.uniform(next(ks), shape, jnp.float32, -b, b)

    params = {"embedding": jax.random.normal(next(ks), (V, E), jnp.float32)}
    kb = 1.0 / np.sqrt(H)
    # Weights pre-transposed to (in, out); PyTorch gate order (i, f, g, o) along columns.
    params["w_ih"] = [unif((D, 4 * H), kb) for _ in range(n_dir)]
    params["w_hh"] = [unif((H, 4 * H), kb) for _ in range(n_dir)]
    params["b"] = [(unif((4 * H,), kb) + unif((4 * H,), kb)).reshape(1, 4 * H)   # b_ih + b_hh
                   for _ in range(n_dir)]

    fc = []
    for layer in range(cfg.n_fc_layers):
        in_ch = n_dir * H if layer == 0 else H
        fb = 1.0 / np.sqrt(in_ch)
        fc.append((unif((in_ch, H), fb), unif((H,), fb).reshape(1, H)))
    params["fc"] = fc

    hb = 1.0 / np.sqrt(H)
    params["w_mean"], params["b_mean"] = unif((H, L), hb), unif((L,), hb).reshape(1, L)
    params["w_logvar"], params["b_logvar"] = unif((H, L), hb), unif((L,), hb).reshape(1, L)
    return params


def pack_params(params, cfg):
    """Pack weights for the kernel: gate-major/direction-minor columns, block-diagonal W_hh,
    precomputed embedding@W_ih table, bf16 MXU operands, fused mean|logvar head."""
    H, E = cfg.hidden_dim, cfg.emb_dim
    n_dir = 2 if cfg.bidirectional else 1
    nH, Gp = n_dir * H, 4 * n_dir * H
    D = cfg.emb_dim + cfg.condition_dim

    w_x = np.zeros((D, Gp), np.float32)
    w_hh = np.zeros((nH, Gp), np.float32)
    b = np.zeros((1, Gp), np.float32)
    for d in range(n_dir):
        wi = np.asarray(params["w_ih"][d])
        wh = np.asarray(params["w_hh"][d])
        bd = np.asarray(params["b"][d])
        for g in range(4):
            cols = slice(g * nH + d * H, g * nH + (d + 1) * H)
            w_x[:, cols] = wi[:, g * H:(g + 1) * H]
            w_hh[d * H:(d + 1) * H, cols] = wh[:, g * H:(g + 1) * H]
            b[:, cols] = bd[:, g * H:(g + 1) * H]

    emb = np.asarray(params["embedding"])
    gx_table = emb @ w_x[:E, :]                                  # (V, Gp), f32

    return dict(
        gx_table=jnp.asarray(gx_table, jnp.bfloat16),
        w_cond=jnp.asarray(w_x[E:, :], jnp.bfloat16),
        w_hh=jnp.asarray(w_hh, jnp.bfloat16),
        b=jnp.asarray(b, jnp.float32),
        fc_w=[w.astype(jnp.bfloat16) for w, _ in params["fc"]],
        fc_b=[bb for _, bb in params["fc"]],
        w_ml=jnp.concatenate([params["w_mean"], params["w_logvar"]], axis=1).astype(jnp.bfloat16),
        b_ml=jnp.concatenate([params["b_mean"], params["b_logvar"]], axis=1),
    )


# ----------------------------------------------------------------------------
# Pure-JAX references
# ----------------------------------------------------------------------------
def encoder_ref_f32(params, melody, condition, cfg):
    """Module-faithful full-f32 reference (embedding -> bi-LSTM -> FC stack -> heads)."""
    H = cfg.hidden_dim
    n_dir = 2 if cfg.bidirectional else 1
    emb = jnp.take(params["embedding"], melody, axis=0)
    source = jnp.concatenate([emb, condition.astype(jnp.float32)], axis=-1)
    B = source.shape[0]

    hs = []
    for d in range(n_dir):
        src = source if d == 0 else source[:, ::-1]
        w_ih, w_hh, b = params["w_ih"][d], params["w_hh"][d], params["b"][d]

        def step(carry, x_t, w_ih=w_ih, w_hh=w_hh, b=b):
            h, c = carry
            gates = x_t @ w_ih + h @ w_hh + b
            i = jax.nn.sigmoid(gates[:, :H])
            f = jax.nn.sigmoid(gates[:, H:2 * H])
            g = jnp.tanh(gates[:, 2 * H:3 * H])
            o = jax.nn.sigmoid(gates[:, 3 * H:])
            c = f * c + i * g
            h = o * jnp.tanh(c)
            return (h, c), None

        z = jnp.zeros((B, H), jnp.float32)
        (h, _), _ = lax.scan(step, (z, z), jnp.swapaxes(src, 0, 1))
        hs.append(h)

    hidden = hs[0] if n_dir == 1 else jnp.concatenate(hs, axis=-1)
    for w, bb in params["fc"]:
        hidden = jnp.maximum(hidden @ w + bb, 0.0)
    mean = hidden @ params["w_mean"] + params["b_mean"]
    logvar = hidden @ params["w_logvar"] + params["b_logvar"]
    return hidden, mean, logvar


def encoder_ref_bf16(params, melody, condition, cfg):
    """Reference mirroring the kernel numerics exactly: bf16 MXU inputs, f32 accumulation,
    f32 gate math, precomputed embedding@W_ih table."""
    bf, f32 = jnp.bfloat16, jnp.float32
    H, E = cfg.hidden_dim, cfg.emb_dim
    n_dir = 2 if cfg.bidirectional else 1
    B, T = melody.shape
    C = condition.shape[-1]

    hs = []
    for d in range(n_dir):
        w_ih_np = np.asarray(params["w_ih"][d])
        table = jnp.asarray(np.asarray(params["embedding"]) @ w_ih_np[:E, :], bf).astype(f32)
        w_c = jnp.asarray(w_ih_np[E:, :], bf)
        w_hh = jnp.asarray(np.asarray(params["w_hh"][d]), bf)
        b = params["b"][d]
        mel = melody if d == 0 else melody[:, ::-1]
        cnd = condition if d == 0 else condition[:, ::-1]
        gx = (table[mel]
              + jnp.dot(cnd.reshape(B * T, C).astype(bf), w_c,
                        preferred_element_type=f32).reshape(B, T, 4 * H)
              + b)

        def step(carry, x_t, w_hh=w_hh):
            h, c = carry
            gates = x_t + jnp.dot(h.astype(bf), w_hh, preferred_element_type=f32)
            i = jax.nn.sigmoid(gates[:, :H])
            f = jax.nn.sigmoid(gates[:, H:2 * H])
            g = jnp.tanh(gates[:, 2 * H:3 * H])
            o = jax.nn.sigmoid(gates[:, 3 * H:])
            c = f * c + i * g
            h = o * jnp.tanh(c)
            return (h, c), None

        z = jnp.zeros((B, H), f32)
        (h, _), _ = lax.scan(step, (z, z), jnp.swapaxes(gx, 0, 1))
        hs.append(h)

    hidden = hs[0] if n_dir == 1 else jnp.concatenate(hs, axis=-1)
    for w, bb in params["fc"]:
        hidden = jnp.maximum(
            jnp.dot(hidden.astype(bf), w.astype(bf), preferred_element_type=f32) + bb, 0.0)
    mean = jnp.dot(hidden.astype(bf), params["w_mean"].astype(bf),
                   preferred_element_type=f32) + params["b_mean"]
    logvar = jnp.dot(hidden.astype(bf), params["w_logvar"].astype(bf),
                     preferred_element_type=f32) + params["b_logvar"]
    return hidden, mean, logvar


# ----------------------------------------------------------------------------
if __name__ == "__main__":
    cfg = Cfg()
    B, T = 2, 8

    key = jax.random.PRNGKey(0)
    k_par, k_mel, k_cond = jax.random.split(key, 3)
    params = init_params(cfg, k_par)
    packed = pack_params(params, cfg)
    melody = jax.random.randint(k_mel, (B, T), 0, cfg.input_dim, dtype=jnp.int32)
    condition = jax.random.normal(k_cond, (B, T, cfg.condition_dim), jnp.float32)

    fwd = jax.jit(functools.partial(encoder_forward, cfg=cfg))
    hidden, mean, logvar = fwd(packed, melody, condition)
    jax.block_until_ready((hidden, mean, logvar))

    # (1) Structural check vs. a pure-JAX reference with the SAME numerics
    #     (bf16 MXU inputs, f32 accumulation): tight tolerance.
    h_b, m_b, lv_b = encoder_ref_bf16(params, melody, condition, cfg)
    np.testing.assert_allclose(np.asarray(hidden), np.asarray(h_b), atol=5e-3, rtol=5e-3)
    np.testing.assert_allclose(np.asarray(mean), np.asarray(m_b), atol=5e-3, rtol=5e-3)
    np.testing.assert_allclose(np.asarray(logvar), np.asarray(lv_b), atol=5e-3, rtol=5e-3)

    # (2) Fidelity check vs. the full-f32 module reference; slack covers bf16 rounding of
    #     MXU inputs (typical max deviation ~1e-2 at these magnitudes).
    h_f, m_f, lv_f = encoder_ref_f32(params, melody, condition, cfg)
    np.testing.assert_allclose(np.asarray(hidden), np.asarray(h_f), atol=5e-2, rtol=5e-2)
    np.testing.assert_allclose(np.asarray(mean), np.asarray(m_f), atol=5e-2, rtol=5e-2)
    np.testing.assert_allclose(np.asarray(logvar), np.asarray(lv_f), atol=5e-2, rtol=5e-2)

    # PyTorch forward returns the FC-stack output `hidden` of shape (B, hidden_dim).
    assert hidden.shape == (B, cfg.hidden_dim)
    assert mean.shape == (B, cfg.latent_dim) and logvar.shape == (B, cfg.latent_dim)
    print("KERNEL_OK")
</pallas_src>

<mosaic_0001>
module attributes {stable_mosaic.version = 11 : i64} {
  func.func @kernel(%arg0: memref<2x8xi32, #tpu.memory_space<vmem>>, %arg1: memref<8x2x8xf32, #tpu.memory_space<vmem>>, %arg2: memref<16x256xbf16, #tpu.memory_space<vmem>>, %arg3: memref<8x256xbf16, #tpu.memory_space<vmem>>, %arg4: memref<64x256xbf16, #tpu.memory_space<vmem>>, %arg5: memref<1x256xf32, #tpu.memory_space<vmem>>, %arg6: memref<64x32xbf16, #tpu.memory_space<vmem>>, %arg7: memref<1x32xf32, #tpu.memory_space<vmem>>, %arg8: memref<32x32xbf16, #tpu.memory_space<vmem>>, %arg9: memref<1x32xf32, #tpu.memory_space<vmem>>, %arg10: memref<32x32xbf16, #tpu.memory_space<vmem>>, %arg11: memref<1x32xf32, #tpu.memory_space<vmem>>, %arg12: memref<2x64xf32, #tpu.memory_space<vmem>>) attributes {dimension_semantics = [], scalar_prefetch = 0 : i64, scratch_operands = 0 : i64, tpu.core_type = #tpu.core_type<tc>} {
    %c0 = arith.constant 0 : index
    %c0_0 = arith.constant 0 : index
    %0 = vector.load %arg0[%c0, %c0_0] : memref<2x8xi32, #tpu.memory_space<vmem>>, vector<2x8xi32>
    %c0_1 = arith.constant 0 : index
    %c0_2 = arith.constant 0 : index
    %1 = vector.load %arg2[%c0_1, %c0_2] : memref<16x256xbf16, #tpu.memory_space<vmem>>, vector<16x256xbf16>
    %c0_3 = arith.constant 0 : index
    %c0_4 = arith.constant 0 : index
    %2 = vector.load %arg3[%c0_3, %c0_4] : memref<8x256xbf16, #tpu.memory_space<vmem>>, vector<8x256xbf16>
    %c0_5 = arith.constant 0 : index
    %c0_6 = arith.constant 0 : index
    %3 = vector.load %arg4[%c0_5, %c0_6] : memref<64x256xbf16, #tpu.memory_space<vmem>>, vector<64x256xbf16>
    %c0_7 = arith.constant 0 : index
    %c0_8 = arith.constant 0 : index
    %4 = vector.load %arg5[%c0_7, %c0_8] : memref<1x256xf32, #tpu.memory_space<vmem>>, vector<1x256xf32>
    %5 = tpu.iota {dimensions = array<i32: 1>} : vector<2x16xi32>
    %6 = vector.extract_strided_slice %0 {offsets = [0, 0], sizes = [2, 1], strides = [1, 1]} : vector<2x8xi32> to vector<2x1xi32>
    %7 = vector.broadcast %6 : vector<2x1xi32> to vector<2x16xi32>
    %8 = arith.cmpi eq, %5, %7 : vector<2x16xi32>
    %cst = arith.constant 1.000000e+00 : f32
    %cst_9 = arith.constant 0.000000e+00 : f32
    %9 = vector.broadcast %cst : f32 to vector<2x16xf32>
    %10 = vector.broadcast %cst_9 : f32 to vector<2x16xf32>
    %11 = arith.select %8, %9, %10 : vector<2x16xi1>, vector<2x16xf32>
    %12 = arith.truncf %11 : vector<2x16xf32> to vector<2x16xbf16>
    %c0_10 = arith.constant 0 : index
    %c0_11 = arith.constant 0 : index
    %c0_12 = arith.constant 0 : index
    %13 = vector.load %arg1[%c0_10, %c0_11, %c0_12] : memref<8x2x8xf32, #tpu.memory_space<vmem>>, vector<1x2x8xf32>
    %14 = vector.shape_cast %13 : vector<1x2x8xf32> to vector<2x8xf32>
    %15 = arith.truncf %14 : vector<2x8xf32> to vector<2x8xbf16>
    %cst_13 = arith.constant dense<0.000000e+00> : vector<2x256xf32>
    %16 = tpu.matmul %12, %1, %cst_13 {dimension_numbers = #tpu.dot_dimension_numbers<[1], [0], [0], [1], [0, 0, 1, 1], [], []>} : vector<2x16xbf16>, vector<16x256xbf16>, vector<2x256xf32> -> vector<2x256xf32>
    %cst_14 = arith.constant dense<0.000000e+00> : vector<2x256xf32>
    %17 = tpu.matmul %15, %2, %cst_14 {dimension_numbers = #tpu.dot_dimension_numbers<[1], [0], [0], [1], [0, 0, 1, 1], [], []>} : vector<2x8xbf16>, vector<8x256xbf16>, vector<2x256xf32> -> vector<2x256xf32>
    %18 = arith.addf %16, %17 : vector<2x256xf32>
    %19 = vector.broadcast %4 : vector<1x256xf32> to vector<2x256xf32>
    %20 = arith.addf %18, %19 : vector<2x256xf32>
    %21 = vector.extract_strided_slice %0 {offsets = [0, 1], sizes = [2, 1], strides = [1, 1]} : vector<2x8xi32> to vector<2x1xi32>
    %22 = vector.broadcast %21 : vector<2x1xi32> to vector<2x16xi32>
    %23 = arith.cmpi eq, %5, %22 : vector<2x16xi32>
    %cst_15 = arith.constant 1.000000e+00 : f32
    %cst_16 = arith.constant 0.000000e+00 : f32
    %24 = vector.broadcast %cst_15 : f32 to vector<2x16xf32>
    %25 = vector.broadcast %cst_16 : f32 to vector<2x16xf32>
    %26 = arith.select %23, %24, %25 : vector<2x16xi1>, vector<2x16xf32>
    %27 = arith.truncf %26 : vector<2x16xf32> to vector<2x16xbf16>
    %c1 = arith.constant 1 : index
    %c0_17 = arith.constant 0 : index
    %c0_18 = arith.constant 0 : index
    %28 = vector.load %arg1[%c1, %c0_17, %c0_18] : memref<8x2x8xf32, #tpu.memory_space<vmem>>, vector<1x2x8xf32>
    %29 = vector.shape_cast %28 : vector<1x2x8xf32> to vector<2x8xf32>
    %30 = arith.truncf %29 : vector<2x8xf32> to vector<2x8xbf16>
    %cst_19 = arith.constant dense<0.000000e+00> : vector<2x256xf32>
    %31 = tpu.matmul %27, %1, %cst_19 {dimension_numbers = #tpu.dot_dimension_numbers<[1], [0], [0], [1], [0, 0, 1, 1], [], []>} : vector<2x16xbf16>, vector<16x256xbf16>, vector<2x256xf32> -> vector<2x256xf32>
    %cst_20 = arith.constant dense<0.000000e+00> : vector<2x256xf32>
    %32 = tpu.matmul %30, %2, %cst_20 {dimension_numbers = #tpu.dot_dimension_numbers<[1], [0], [0], [1], [0, 0, 1, 1], [], []>} : vector<2x8xbf16>, vector<8x256xbf16>, vector<2x256xf32> -> vector<2x256xf32>
    %33 = arith.addf %31, %32 : vector<2x256xf32>
    %34 = vector.broadcast %4 : vector<1x256xf32> to vector<2x256xf32>
    %35 = arith.addf %33, %34 : vector<2x256xf32>
    %36 = vector.extract_strided_slice %0 {offsets = [0, 2], sizes = [2, 1], strides = [1, 1]} : vector<2x8xi32> to vector<2x1xi32>
    %37 = vector.broadcast %36 : vector<2x1xi32> to vector<2x16xi32>
    %38 = arith.cmpi eq, %5, %37 : vector<2x16xi32>
    %cst_21 = arith.constant 1.000000e+00 : f32
    %cst_22 = arith.constant 0.000000e+00 : f32
    %39 = vector.broadcast %cst_21 : f32 to vector<2x16xf32>
    %40 = vector.broadcast %cst_22 : f32 to vector<2x16xf32>
    %41 = arith.select %38, %39, %40 : vector<2x16xi1>, vector<2x16xf32>
    %42 = arith.truncf %41 : vector<2x16xf32> to vector<2x16xbf16>
    %c2 = arith.constant 2 : index
    %c0_23 = arith.constant 0 : index
    %c0_24 = arith.constant 0 : index
    %43 = vector.load %arg1[%c2, %c0_23, %c0_24] : memref<8x2x8xf32, #tpu.memory_space<vmem>>, vector<1x2x8xf32>
    %44 = vector.shape_cast %43 : vector<1x2x8xf32> to vector<2x8xf32>
    %45 = arith.truncf %44 : vector<2x8xf32> to vector<2x8xbf16>
    %cst_25 = arith.constant dense<0.000000e+00> : vector<2x256xf32>
    %46 = tpu.matmul %42, %1, %cst_25 {dimension_numbers = #tpu.dot_dimension_numbers<[1], [0], [0], [1], [0, 0, 1, 1], [], []>} : vector<2x16xbf16>, vector<16x256xbf16>, vector<2x256xf32> -> vector<2x256xf32>
    %cst_26 = arith.constant dense<0.000000e+00> : vector<2x256xf32>
    %47 = tpu.matmul %45, %2, %cst_26 {dimension_numbers = #tpu.dot_dimension_numbers<[1], [0], [0], [1], [0, 0, 1, 1], [], []>} : vector<2x8xbf16>, vector<8x256xbf16>, vector<2x256xf32> -> vector<2x256xf32>
    %48 = arith.addf %46, %47 : vector<2x256xf32>
    %49 = vector.broadcast %4 : vector<1x256xf32> to vector<2x256xf32>
    %50 = arith.addf %48, %49 : vector<2x256xf32>
    %51 = vector.extract_strided_slice %0 {offsets = [0, 3], sizes = [2, 1], strides = [1, 1]} : vector<2x8xi32> to vector<2x1xi32>
    %52 = vector.broadcast %51 : vector<2x1xi32> to vector<2x16xi32>
    %53 = arith.cmpi eq, %5, %52 : vector<2x16xi32>
    %cst_27 = arith.constant 1.000000e+00 : f32
    %cst_28 = arith.constant 0.000000e+00 : f32
    %54 = vector.broadcast %cst_27 : f32 to vector<2x16xf32>
    %55 = vector.broadcast %cst_28 : f32 to vector<2x16xf32>
    %56 = arith.select %53, %54, %55 : vector<2x16xi1>, vector<2x16xf32>
    %57 = arith.truncf %56 : vector<2x16xf32> to vector<2x16xbf16>
    %c3 = arith.constant 3 : index
    %c0_29 = arith.constant 0 : index
    %c0_30 = arith.constant 0 : index
    %58 = vector.load %arg1[%c3, %c0_29, %c0_30] : memref<8x2x8xf32, #tpu.memory_space<vmem>>, vector<1x2x8xf32>
    %59 = vector.shape_cast %58 : vector<1x2x8xf32> to vector<2x8xf32>
    %60 = arith.truncf %59 : vector<2x8xf32> to vector<2x8xbf16>
    %cst_31 = arith.constant dense<0.000000e+00> : vector<2x256xf32>
    %61 = tpu.matmul %57, %1, %cst_31 {dimension_numbers = #tpu.dot_dimension_numbers<[1], [0], [0], [1], [0, 0, 1, 1], [], []>} : vector<2x16xbf16>, vector<16x256xbf16>, vector<2x256xf32> -> vector<2x256xf32>
    %cst_32 = arith.constant dense<0.000000e+00> : vector<2x256xf32>
    %62 = tpu.matmul %60, %2, %cst_32 {dimension_numbers = #tpu.dot_dimension_numbers<[1], [0], [0], [1], [0, 0, 1, 1], [], []>} : vector<2x8xbf16>, vector<8x256xbf16>, vector<2x256xf32> -> vector<2x256xf32>
    %63 = arith.addf %61, %62 : vector<2x256xf32>
    %64 = vector.broadcast %4 : vector<1x256xf32> to vector<2x256xf32>
    %65 = arith.addf %63, %64 : vector<2x256xf32>
    %66 = vector.extract_strided_slice %0 {offsets = [0, 4], sizes = [2, 1], strides = [1, 1]} : vector<2x8xi32> to vector<2x1xi32>
    %67 = vector.broadcast %66 : vector<2x1xi32> to vector<2x16xi32>
    %68 = arith.cmpi eq, %5, %67 : vector<2x16xi32>
    %cst_33 = arith.constant 1.000000e+00 : f32
    %cst_34 = arith.constant 0.000000e+00 : f32
    %69 = vector.broadcast %cst_33 : f32 to vector<2x16xf32>
    %70 = vector.broadcast %cst_34 : f32 to vector<2x16xf32>
    %71 = arith.select %68, %69, %70 : vector<2x16xi1>, vector<2x16xf32>
    %72 = arith.truncf %71 : vector<2x16xf32> to vector<2x16xbf16>
    %c4 = arith.constant 4 : index
    %c0_35 = arith.constant 0 : index
    %c0_36 = arith.constant 0 : index
    %73 = vector.load %arg1[%c4, %c0_35, %c0_36] : memref<8x2x8xf32, #tpu.memory_space<vmem>>, vector<1x2x8xf32>
    %74 = vector.shape_cast %73 : vector<1x2x8xf32> to vector<2x8xf32>
    %75 = arith.truncf %74 : vector<2x8xf32> to vector<2x8xbf16>
    %cst_37 = arith.constant dense<0.000000e+00> : vector<2x256xf32>
    %76 = tpu.matmul %72, %1, %cst_37 {dimension_numbers = #tpu.dot_dimension_numbers<[1], [0], [0], [1], [0, 0, 1, 1], [], []>} : vector<2x16xbf16>, vector<16x256xbf16>, vector<2x256xf32> -> vector<2x256xf32>
    %cst_38 = arith.constant dense<0.000000e+00> : vector<2x256xf32>
    %77 = tpu.matmul %75, %2, %cst_38 {dimension_numbers = #tpu.dot_dimension_numbers<[1], [0], [0], [1], [0, 0, 1, 1], [], []>} : vector<2x8xbf16>, vector<8x256xbf16>, vector<2x256xf32> -> vector<2x256xf32>
    %78 = arith.addf %76, %77 : vector<2x256xf32>
    %79 = vector.broadcast %4 : vector<1x256xf32> to vector<2x256xf32>
    %80 = arith.addf %78, %79 : vector<2x256xf32>
    %81 = vector.extract_strided_slice %0 {offsets = [0, 5], sizes = [2, 1], strides = [1, 1]} : vector<2x8xi32> to vector<2x1xi32>
    %82 = vector.broadcast %81 : vector<2x1xi32> to vector<2x16xi32>
    %83 = arith.cmpi eq, %5, %82 : vector<2x16xi32>
    %cst_39 = arith.constant 1.000000e+00 : f32
    %cst_40 = arith.constant 0.000000e+00 : f32
    %84 = vector.broadcast %cst_39 : f32 to vector<2x16xf32>
    %85 = vector.broadcast %cst_40 : f32 to vector<2x16xf32>
    %86 = arith.select %83, %84, %85 : vector<2x16xi1>, vector<2x16xf32>
    %87 = arith.truncf %86 : vector<2x16xf32> to vector<2x16xbf16>
    %c5 = arith.constant 5 : index
    %c0_41 = arith.constant 0 : index
    %c0_42 = arith.constant 0 : index
    %88 = vector.load %arg1[%c5, %c0_41, %c0_42] : memref<8x2x8xf32, #tpu.memory_space<vmem>>, vector<1x2x8xf32>
    %89 = vector.shape_cast %88 : vector<1x2x8xf32> to vector<2x8xf32>
    %90 = arith.truncf %89 : vector<2x8xf32> to vector<2x8xbf16>
    %cst_43 = arith.constant dense<0.000000e+00> : vector<2x256xf32>
    %91 = tpu.matmul %87, %1, %cst_43 {dimension_numbers = #tpu.dot_dimension_numbers<[1], [0], [0], [1], [0, 0, 1, 1], [], []>} : vector<2x16xbf16>, vector<16x256xbf16>, vector<2x256xf32> -> vector<2x256xf32>
    %cst_44 = arith.constant dense<0.000000e+00> : vector<2x256xf32>
    %92 = tpu.matmul %90, %2, %cst_44 {dimension_numbers = #tpu.dot_dimension_numbers<[1], [0], [0], [1], [0, 0, 1, 1], [], []>} : vector<2x8xbf16>, vector<8x256xbf16>, vector<2x256xf32> -> vector<2x256xf32>
    %93 = arith.addf %91, %92 : vector<2x256xf32>
    %94 = vector.broadcast %4 : vector<1x256xf32> to vector<2x256xf32>
    %95 = arith.addf %93, %94 : vector<2x256xf32>
    %96 = vector.extract_strided_slice %0 {offsets = [0, 6], sizes = [2, 1], strides = [1, 1]} : vector<2x8xi32> to vector<2x1xi32>
    %97 = vector.broadcast %96 : vector<2x1xi32> to vector<2x16xi32>
    %98 = arith.cmpi eq, %5, %97 : vector<2x16xi32>
    %cst_45 = arith.constant 1.000000e+00 : f32
    %cst_46 = arith.constant 0.000000e+00 : f32
    %99 = vector.broadcast %cst_45 : f32 to vector<2x16xf32>
    %100 = vector.broadcast %cst_46 : f32 to vector<2x16xf32>
    %101 = arith.select %98, %99, %100 : vector<2x16xi1>, vector<2x16xf32>
    %102 = arith.truncf %101 : vector<2x16xf32> to vector<2x16xbf16>
    %c6 = arith.constant 6 : index
    %c0_47 = arith.constant 0 : index
    %c0_48 = arith.constant 0 : index
    %103 = vector.load %arg1[%c6, %c0_47, %c0_48] : memref<8x2x8xf32, #tpu.memory_space<vmem>>, vector<1x2x8xf32>
    %104 = vector.shape_cast %103 : vector<1x2x8xf32> to vector<2x8xf32>
    %105 = arith.truncf %104 : vector<2x8xf32> to vector<2x8xbf16>
    %cst_49 = arith.constant dense<0.000000e+00> : vector<2x256xf32>
    %106 = tpu.matmul %102, %1, %cst_49 {dimension_numbers = #tpu.dot_dimension_numbers<[1], [0], [0], [1], [0, 0, 1, 1], [], []>} : vector<2x16xbf16>, vector<16x256xbf16>, vector<2x256xf32> -> vector<2x256xf32>
    %cst_50 = arith.constant dense<0.000000e+00> : vector<2x256xf32>
    %107 = tpu.matmul %105, %2, %cst_50 {dimension_numbers = #tpu.dot_dimension_numbers<[1], [0], [0], [1], [0, 0, 1, 1], [], []>} : vector<2x8xbf16>, vector<8x256xbf16>, vector<2x256xf32> -> vector<2x256xf32>
    %108 = arith.addf %106, %107 : vector<2x256xf32>
    %109 = vector.broadcast %4 : vector<1x256xf32> to vector<2x256xf32>
    %110 = arith.addf %108, %109 : vector<2x256xf32>
    %111 = vector.extract_strided_slice %0 {offsets = [0, 7], sizes = [2, 1], strides = [1, 1]} : vector<2x8xi32> to vector<2x1xi32>
    %112 = vector.broadcast %111 : vector<2x1xi32> to vector<2x16xi32>
    %113 = arith.cmpi eq, %5, %112 : vector<2x16xi32>
    %cst_51 = arith.constant 1.000000e+00 : f32
    %cst_52 = arith.constant 0.000000e+00 : f32
    %114 = vector.broadcast %cst_51 : f32 to vector<2x16xf32>
    %115 = vector.broadcast %cst_52 : f32 to vector<2x16xf32>
    %116 = arith.select %113, %114, %115 : vector<2x16xi1>, vector<2x16xf32>
    %117 = arith.truncf %116 : vector<2x16xf32> to vector<2x16xbf16>
    %c7 = arith.constant 7 : index
    %c0_53 = arith.constant 0 : index
    %c0_54 = arith.constant 0 : index
    %118 = vector.load %arg1[%c7, %c0_53, %c0_54] : memref<8x2x8xf32, #tpu.memory_space<vmem>>, vector<1x2x8xf32>
    %119 = vector.shape_cast %118 : vector<1x2x8xf32> to vector<2x8xf32>
    %120 = arith.truncf %119 : vector<2x8xf32> to vector<2x8xbf16>
    %cst_55 = arith.constant dense<0.000000e+00> : vector<2x256xf32>
    %121 = tpu.matmul %117, %1, %cst_55 {dimension_numbers = #tpu.dot_dimension_numbers<[1], [0], [0], [1], [0, 0, 1, 1], [], []>} : vector<2x16xbf16>, vector<16x256xbf16>, vector<2x256xf32> -> vector<2x256xf32>
    %cst_56 = arith.constant dense<0.000000e+00> : vector<2x256xf32>
    %122 = tpu.matmul %120, %2, %cst_56 {dimension_numbers = #tpu.dot_dimension_numbers<[1], [0], [0], [1], [0, 0, 1, 1], [], []>} : vector<2x8xbf16>, vector<8x256xbf16>, vector<2x256xf32> -> vector<2x256xf32>
    %123 = arith.addf %121, %122 : vector<2x256xf32>
    %124 = vector.broadcast %4 : vector<1x256xf32> to vector<2x256xf32>
    %125 = arith.addf %123, %124 : vector<2x256xf32>
    %126 = tpu.iota {dimensions = array<i32: 1>} : vector<2x256xi32>
    %c128_i32 = arith.constant 128 : i32
    %127 = vector.broadcast %c128_i32 : i32 to vector<2x256xi32>
    %128 = arith.cmpi sge, %126, %127 : vector<2x256xi32>
    %c192_i32 = arith.constant 192 : i32
    %129 = vector.broadcast %c192_i32 : i32 to vector<2x256xi32>
    %130 = arith.cmpi slt, %126, %129 : vector<2x256xi32>
    %131 = arith.andi %128, %130 : vector<2x256xi1>
    %c32_i32 = arith.constant 32 : i32
    %132 = vector.broadcast %c32_i32 : i32 to vector<2x256xi32>
    %133 = arith.cmpi sge, %126, %132 : vector<2x256xi32>
    %c64_i32 = arith.constant 64 : i32
    %134 = vector.broadcast %c64_i32 : i32 to vector<2x256xi32>
    %135 = arith.cmpi slt, %126, %134 : vector<2x256xi32>
    %136 = arith.andi %133, %135 : vector<2x256xi1>
    %c96_i32 = arith.constant 96 : i32
    %137 = vector.broadcast %c96_i32 : i32 to vector<2x256xi32>
    %138 = arith.cmpi sge, %126, %137 : vector<2x256xi32>
    %c128_i32_57 = arith.constant 128 : i32
    %139 = vector.broadcast %c128_i32_57 : i32 to vector<2x256xi32>
    %140 = arith.cmpi slt, %126, %139 : vector<2x256xi32>
    %141 = arith.andi %138, %140 : vector<2x256xi1>
    %c160_i32 = arith.constant 160 : i32
    %142 = vector.broadcast %c160_i32 : i32 to vector<2x256xi32>
    %143 = arith.cmpi sge, %126, %142 : vector<2x256xi32>
    %c192_i32_58 = arith.constant 192 : i32
    %144 = vector.broadcast %c192_i32_58 : i32 to vector<2x256xi32>
    %145 = arith.cmpi slt, %126, %144 : vector<2x256xi32>
    %146 = arith.andi %143, %145 : vector<2x256xi1>
    %c224_i32 = arith.constant 224 : i32
    %147 = vector.broadcast %c224_i32 : i32 to vector<2x256xi32>
    %148 = arith.cmpi sge, %126, %147 : vector<2x256xi32>
    %c256_i32 = arith.constant 256 : i32
    %149 = vector.broadcast %c256_i32 : i32 to vector<2x256xi32>
    %150 = arith.cmpi slt, %126, %149 : vector<2x256xi32>
    %151 = arith.andi %148, %150 : vector<2x256xi1>
    %152 = arith.ori %136, %141 : vector<2x256xi1>
    %153 = arith.ori %152, %146 : vector<2x256xi1>
    %154 = arith.ori %153, %151 : vector<2x256xi1>
    %cst_59 = arith.constant 0.000000e+00 : f32
    %155 = vector.broadcast %cst_59 : f32 to vector<2x64xf32>
    %cst_60 = arith.constant 0.000000e+00 : f32
    %156 = vector.broadcast %cst_60 : f32 to vector<2x64xf32>
    %157 = arith.select %154, %125, %20 : vector<2x256xi1>, vector<2x256xf32>
    %158 = arith.truncf %155 : vector<2x64xf32> to vector<2x64xbf16>
    %cst_61 = arith.constant dense<0.000000e+00> : vector<2x256xf32>
    %159 = tpu.matmul %158, %3, %cst_61 {dimension_numbers = #tpu.dot_dimension_numbers<[1], [0], [0], [1], [0, 0, 1, 1], [], []>} : vector<2x64xbf16>, vector<64x256xbf16>, vector<2x256xf32> -> vector<2x256xf32>
    %160 = arith.addf %157, %159 : vector<2x256xf32>
    %161 = math.tanh %160 : vector<2x256xf32>
    %162 = arith.negf %160 : vector<2x256xf32>
    %163 = math.exp %162 : vector<2x256xf32>
    %cst_62 = arith.constant 1.000000e+00 : f32
    %164 = vector.broadcast %cst_62 : f32 to vector<2x256xf32>
    %165 = arith.addf %164, %163 : vector<2x256xf32>
    %166 = arith.divf %164, %165 : vector<2x256xf32>
    %167 = arith.select %131, %161, %166 : vector<2x256xi1>, vector<2x256xf32>
    %168 = vector.extract_strided_slice %167 {offsets = [0, 0], sizes = [2, 64], strides = [1, 1]} : vector<2x256xf32> to vector<2x64xf32>
    %169 = vector.extract_strided_slice %167 {offsets = [0, 64], sizes = [2, 64], strides = [1, 1]} : vector<2x256xf32> to vector<2x64xf32>
    %170 = vector.extract_strided_slice %167 {offsets = [0, 128], sizes = [2, 64], strides = [1, 1]} : vector<2x256xf32> to vector<2x64xf32>
    %171 = vector.extract_strided_slice %167 {offsets = [0, 192], sizes = [2, 64], strides = [1, 1]} : vector<2x256xf32> to vector<2x64xf32>
    %172 = arith.mulf %169, %156 : vector<2x64xf32>
    %173 = arith.mulf %168, %170 : vector<2x64xf32>
    %174 = arith.addf %172, %173 : vector<2x64xf32>
    %175 = math.tanh %174 : vector<2x64xf32>
    %176 = arith.mulf %171, %175 : vector<2x64xf32>
    %177 = arith.select %154, %110, %35 : vector<2x256xi1>, vector<2x256xf32>
    %178 = arith.truncf %176 : vector<2x64xf32> to vector<2x64xbf16>
    %cst_63 = arith.constant dense<0.000000e+00> : vector<2x256xf32>
    %179 = tpu.matmul %178, %3, %cst_63 {dimension_numbers = #tpu.dot_dimension_numbers<[1], [0], [0], [1], [0, 0, 1, 1], [], []>} : vector<2x64xbf16>, vector<64x256xbf16>, vector<2x256xf32> -> vector<2x256xf32>
    %180 = arith.addf %177, %179 : vector<2x256xf32>
    %181 = math.tanh %180 : vector<2x256xf32>
    %182 = arith.negf %180 : vector<2x256xf32>
    %183 = math.exp %182 : vector<2x256xf32>
    %cst_64 = arith.constant 1.000000e+00 : f32
    %184 = vector.broadcast %cst_64 : f32 to vector<2x256xf32>
    %185 = arith.addf %184, %183 : vector<2x256xf32>
    %186 = arith.divf %184, %185 : vector<2x256xf32>
    %187 = arith.select %131, %181, %186 : vector<2x256xi1>, vector<2x256xf32>
    %188 = vector.extract_strided_slice %187 {offsets = [0, 0], sizes = [2, 64], strides = [1, 1]} : vector<2x256xf32> to vector<2x64xf32>
    %189 = vector.extract_strided_slice %187 {offsets = [0, 64], sizes = [2, 64], strides = [1, 1]} : vector<2x256xf32> to vector<2x64xf32>
    %190 = vector.extract_strided_slice %187 {offsets = [0, 128], sizes = [2, 64], strides = [1, 1]} : vector<2x256xf32> to vector<2x64xf32>
    %191 = vector.extract_strided_slice %187 {offsets = [0, 192], sizes = [2, 64], strides = [1, 1]} : vector<2x256xf32> to vector<2x64xf32>
    %192 = arith.mulf %189, %174 : vector<2x64xf32>
    %193 = arith.mulf %188, %190 : vector<2x64xf32>
    %194 = arith.addf %192, %193 : vector<2x64xf32>
    %195 = math.tanh %194 : vector<2x64xf32>
    %196 = arith.mulf %191, %195 : vector<2x64xf32>
    %197 = arith.select %154, %95, %50 : vector<2x256xi1>, vector<2x256xf32>
    %198 = arith.truncf %196 : vector<2x64xf32> to vector<2x64xbf16>
    %cst_65 = arith.constant dense<0.000000e+00> : vector<2x256xf32>
    %199 = tpu.matmul %198, %3, %cst_65 {dimension_numbers = #tpu.dot_dimension_numbers<[1], [0], [0], [1], [0, 0, 1, 1], [], []>} : vector<2x64xbf16>, vector<64x256xbf16>, vector<2x256xf32> -> vector<2x256xf32>
    %200 = arith.addf %197, %199 : vector<2x256xf32>
    %201 = math.tanh %200 : vector<2x256xf32>
    %202 = arith.negf %200 : vector<2x256xf32>
    %203 = math.exp %202 : vector<2x256xf32>
    %cst_66 = arith.constant 1.000000e+00 : f32
    %204 = vector.broadcast %cst_66 : f32 to vector<2x256xf32>
    %205 = arith.addf %204, %203 : vector<2x256xf32>
    %206 = arith.divf %204, %205 : vector<2x256xf32>
    %207 = arith.select %131, %201, %206 : vector<2x256xi1>, vector<2x256xf32>
    %208 = vector.extract_strided_slice %207 {offsets = [0, 0], sizes = [2, 64], strides = [1, 1]} : vector<2x256xf32> to vector<2x64xf32>
    %209 = vector.extract_strided_slice %207 {offsets = [0, 64], sizes = [2, 64], strides = [1, 1]} : vector<2x256xf32> to vector<2x64xf32>
    %210 = vector.extract_strided_slice %207 {offsets = [0, 128], sizes = [2, 64], strides = [1, 1]} : vector<2x256xf32> to vector<2x64xf32>
    %211 = vector.extract_strided_slice %207 {offsets = [0, 192], sizes = [2, 64], strides = [1, 1]} : vector<2x256xf32> to vector<2x64xf32>
    %212 = arith.mulf %209, %194 : vector<2x64xf32>
    %213 = arith.mulf %208, %210 : vector<2x64xf32>
    %214 = arith.addf %212, %213 : vector<2x64xf32>
    %215 = math.tanh %214 : vector<2x64xf32>
    %216 = arith.mulf %211, %215 : vector<2x64xf32>
    %217 = arith.select %154, %80, %65 : vector<2x256xi1>, vector<2x256xf32>
    %218 = arith.truncf %216 : vector<2x64xf32> to vector<2x64xbf16>
    %cst_67 = arith.constant dense<0.000000e+00> : vector<2x256xf32>
    %219 = tpu.matmul %218, %3, %cst_67 {dimension_numbers = #tpu.dot_dimension_numbers<[1], [0], [0], [1], [0, 0, 1, 1], [], []>} : vector<2x64xbf16>, vector<64x256xbf16>, vector<2x256xf32> -> vector<2x256xf32>
    %220 = arith.addf %217, %219 : vector<2x256xf32>
    %221 = math.tanh %220 : vector<2x256xf32>
    %222 = arith.negf %220 : vector<2x256xf32>
    %223 = math.exp %222 : vector<2x256xf32>
    %cst_68 = arith.constant 1.000000e+00 : f32
    %224 = vector.broadcast %cst_68 : f32 to vector<2x256xf32>
    %225 = arith.addf %224, %223 : vector<2x256xf32>
    %226 = arith.divf %224, %225 : vector<2x256xf32>
    %227 = arith.select %131, %221, %226 : vector<2x256xi1>, vector<2x256xf32>
    %228 = vector.extract_strided_slice %227 {offsets = [0, 0], sizes = [2, 64], strides = [1, 1]} : vector<2x256xf32> to vector<2x64xf32>
    %229 = vector.extract_strided_slice %227 {offsets = [0, 64], sizes = [2, 64], strides = [1, 1]} : vector<2x256xf32> to vector<2x64xf32>
    %230 = vector.extract_strided_slice %227 {offsets = [0, 128], sizes = [2, 64], strides = [1, 1]} : vector<2x256xf32> to vector<2x64xf32>
    %231 = vector.extract_strided_slice %227 {offsets = [0, 192], sizes = [2, 64], strides = [1, 1]} : vector<2x256xf32> to vector<2x64xf32>
    %232 = arith.mulf %229, %214 : vector<2x64xf32>
    %233 = arith.mulf %228, %230 : vector<2x64xf32>
    %234 = arith.addf %232, %233 : vector<2x64xf32>
    %235 = math.tanh %234 : vector<2x64xf32>
    %236 = arith.mulf %231, %235 : vector<2x64xf32>
    %237 = arith.select %154, %65, %80 : vector<2x256xi1>, vector<2x256xf32>
    %238 = arith.truncf %236 : vector<2x64xf32> to vector<2x64xbf16>
    %cst_69 = arith.constant dense<0.000000e+00> : vector<2x256xf32>
    %239 = tpu.matmul %238, %3, %cst_69 {dimension_numbers = #tpu.dot_dimension_numbers<[1], [0], [0], [1], [0, 0, 1, 1], [], []>} : vector<2x64xbf16>, vector<64x256xbf16>, vector<2x256xf32> -> vector<2x256xf32>
    %240 = arith.addf %237, %239 : vector<2x256xf32>
    %241 = math.tanh %240 : vector<2x256xf32>
    %242 = arith.negf %240 : vector<2x256xf32>
    %243 = math.exp %242 : vector<2x256xf32>
    %cst_70 = arith.constant 1.000000e+00 : f32
    %244 = vector.broadcast %cst_70 : f32 to vector<2x256xf32>
    %245 = arith.addf %244, %243 : vector<2x256xf32>
    %246 = arith.divf %244, %245 : vector<2x256xf32>
    %247 = arith.select %131, %241, %246 : vector<2x256xi1>, vector<2x256xf32>
    %248 = vector.extract_strided_slice %247 {offsets = [0, 0], sizes = [2, 64], strides = [1, 1]} : vector<2x256xf32> to vector<2x64xf32>
    %249 = vector.extract_strided_slice %247 {offsets = [0, 64], sizes = [2, 64], strides = [1, 1]} : vector<2x256xf32> to vector<2x64xf32>
    %250 = vector.extract_strided_slice %247 {offsets = [0, 128], sizes = [2, 64], strides = [1, 1]} : vector<2x256xf32> to vector<2x64xf32>
    %251 = vector.extract_strided_slice %247 {offsets = [0, 192], sizes = [2, 64], strides = [1, 1]} : vector<2x256xf32> to vector<2x64xf32>
    %252 = arith.mulf %249, %234 : vector<2x64xf32>
    %253 = arith.mulf %248, %250 : vector<2x64xf32>
    %254 = arith.addf %252, %253 : vector<2x64xf32>
    %255 = math.tanh %254 : vector<2x64xf32>
    %256 = arith.mulf %251, %255 : vector<2x64xf32>
    %257 = arith.select %154, %50, %95 : vector<2x256xi1>, vector<2x256xf32>
    %258 = arith.truncf %256 : vector<2x64xf32> to vector<2x64xbf16>
    %cst_71 = arith.constant dense<0.000000e+00> : vector<2x256xf32>
    %259 = tpu.matmul %258, %3, %cst_71 {dimension_numbers = #tpu.dot_dimension_numbers<[1], [0], [0], [1], [0, 0, 1, 1], [], []>} : vector<2x64xbf16>, vector<64x256xbf16>, vector<2x256xf32> -> vector<2x256xf32>
    %260 = arith.addf %257, %259 : vector<2x256xf32>
    %261 = math.tanh %260 : vector<2x256xf32>
    %262 = arith.negf %260 : vector<2x256xf32>
    %263 = math.exp %262 : vector<2x256xf32>
    %cst_72 = arith.constant 1.000000e+00 : f32
    %264 = vector.broadcast %cst_72 : f32 to vector<2x256xf32>
    %265 = arith.addf %264, %263 : vector<2x256xf32>
    %266 = arith.divf %264, %265 : vector<2x256xf32>
    %267 = arith.select %131, %261, %266 : vector<2x256xi1>, vector<2x256xf32>
    %268 = vector.extract_strided_slice %267 {offsets = [0, 0], sizes = [2, 64], strides = [1, 1]} : vector<2x256xf32> to vector<2x64xf32>
    %269 = vector.extract_strided_slice %267 {offsets = [0, 64], sizes = [2, 64], strides = [1, 1]} : vector<2x256xf32> to vector<2x64xf32>
    %270 = vector.extract_strided_slice %267 {offsets = [0, 128], sizes = [2, 64], strides = [1, 1]} : vector<2x256xf32> to vector<2x64xf32>
    %271 = vector.extract_strided_slice %267 {offsets = [0, 192], sizes = [2, 64], strides = [1, 1]} : vector<2x256xf32> to vector<2x64xf32>
    %272 = arith.mulf %269, %254 : vector<2x64xf32>
    %273 = arith.mulf %268, %270 : vector<2x64xf32>
    %274 = arith.addf %272, %273 : vector<2x64xf32>
    %275 = math.tanh %274 : vector<2x64xf32>
    %276 = arith.mulf %271, %275 : vector<2x64xf32>
    %277 = arith.select %154, %35, %110 : vector<2x256xi1>, vector<2x256xf32>
    %278 = arith.truncf %276 : vector<2x64xf32> to vector<2x64xbf16>
    %cst_73 = arith.constant dense<0.000000e+00> : vector<2x256xf32>
    %279 = tpu.matmul %278, %3, %cst_73 {dimension_numbers = #tpu.dot_dimension_numbers<[1], [0], [0], [1], [0, 0, 1, 1], [], []>} : vector<2x64xbf16>, vector<64x256xbf16>, vector<2x256xf32> -> vector<2x256xf32>
    %280 = arith.addf %277, %279 : vector<2x256xf32>
    %281 = math.tanh %280 : vector<2x256xf32>
    %282 = arith.negf %280 : vector<2x256xf32>
    %283 = math.exp %282 : vector<2x256xf32>
    %cst_74 = arith.constant 1.000000e+00 : f32
    %284 = vector.broadcast %cst_74 : f32 to vector<2x256xf32>
    %285 = arith.addf %284, %283 : vector<2x256xf32>
    %286 = arith.divf %284, %285 : vector<2x256xf32>
    %287 = arith.select %131, %281, %286 : vector<2x256xi1>, vector<2x256xf32>
    %288 = vector.extract_strided_slice %287 {offsets = [0, 0], sizes = [2, 64], strides = [1, 1]} : vector<2x256xf32> to vector<2x64xf32>
    %289 = vector.extract_strided_slice %287 {offsets = [0, 64], sizes = [2, 64], strides = [1, 1]} : vector<2x256xf32> to vector<2x64xf32>
    %290 = vector.extract_strided_slice %287 {offsets = [0, 128], sizes = [2, 64], strides = [1, 1]} : vector<2x256xf32> to vector<2x64xf32>
    %291 = vector.extract_strided_slice %287 {offsets = [0, 192], sizes = [2, 64], strides = [1, 1]} : vector<2x256xf32> to vector<2x64xf32>
    %292 = arith.mulf %289, %274 : vector<2x64xf32>
    %293 = arith.mulf %288, %290 : vector<2x64xf32>
    %294 = arith.addf %292, %293 : vector<2x64xf32>
    %295 = math.tanh %294 : vector<2x64xf32>
    %296 = arith.mulf %291, %295 : vector<2x64xf32>
    %297 = arith.select %154, %20, %125 : vector<2x256xi1>, vector<2x256xf32>
    %298 = arith.truncf %296 : vector<2x64xf32> to vector<2x64xbf16>
    %cst_75 = arith.constant dense<0.000000e+00> : vector<2x256xf32>
    %299 = tpu.matmul %298, %3, %cst_75 {dimension_numbers = #tpu.dot_dimension_numbers<[1], [0], [0], [1], [0, 0, 1, 1], [], []>} : vector<2x64xbf16>, vector<64x256xbf16>, vector<2x256xf32> -> vector<2x256xf32>
    %300 = arith.addf %297, %299 : vector<2x256xf32>
    %301 = math.tanh %300 : vector<2x256xf32>
    %302 = arith.negf %300 : vector<2x256xf32>
    %303 = math.exp %302 : vector<2x256xf32>
    %cst_76 = arith.constant 1.000000e+00 : f32
    %304 = vector.broadcast %cst_76 : f32 to vector<2x256xf32>
    %305 = arith.addf %304, %303 : vector<2x256xf32>
    %306 = arith.divf %304, %305 : vector<2x256xf32>
    %307 = arith.select %131, %301, %306 : vector<2x256xi1>, vector<2x256xf32>
    %308 = vector.extract_strided_slice %307 {offsets = [0, 0], sizes = [2, 64], strides = [1, 1]} : vector<2x256xf32> to vector<2x64xf32>
    %309 = vector.extract_strided_slice %307 {offsets = [0, 64], sizes = [2, 64], strides = [1, 1]} : vector<2x256xf32> to vector<2x64xf32>
    %310 = vector.extract_strided_slice %307 {offsets = [0, 128], sizes = [2, 64], strides = [1, 1]} : vector<2x256xf32> to vector<2x64xf32>
    %311 = vector.extract_strided_slice %307 {offsets = [0, 192], sizes = [2, 64], strides = [1, 1]} : vector<2x256xf32> to vector<2x64xf32>
    %312 = arith.mulf %309, %294 : vector<2x64xf32>
    %313 = arith.mulf %308, %310 : vector<2x64xf32>
    %314 = arith.addf %312, %313 : vector<2x64xf32>
    %315 = math.tanh %314 : vector<2x64xf32>
    %316 = arith.mulf %311, %315 : vector<2x64xf32>
    %317 = arith.truncf %316 : vector<2x64xf32> to vector<2x64xbf16>
    %c0_77 = arith.constant 0 : index
    %c0_78 = arith.constant 0 : index
    %318 = vector.load %arg6[%c0_77, %c0_78] : memref<64x32xbf16, #tpu.memory_space<vmem>>, vector<64x32xbf16>
    %cst_79 = arith.constant dense<0.000000e+00> : vector<2x32xf32>
    %319 = tpu.matmul %317, %318, %cst_79 {dimension_numbers = #tpu.dot_dimension_numbers<[1], [0], [0], [1], [0, 0, 1, 1], [], []>} : vector<2x64xbf16>, vector<64x32xbf16>, vector<2x32xf32> -> vector<2x32xf32>
    %c0_80 = arith.constant 0 : index
    %c0_81 = arith.constant 0 : index
    %320 = vector.load %arg7[%c0_80, %c0_81] : memref<1x32xf32, #tpu.memory_space<vmem>>, vector<1x32xf32>
    %321 = vector.broadcast %320 : vector<1x32xf32> to vector<2x32xf32>
    %322 = arith.addf %319, %321 : vector<2x32xf32>
    %cst_82 = arith.constant 0.000000e+00 : f32
    %323 = vector.broadcast %cst_82 : f32 to vector<2x32xf32>
    %324 = arith.maximumf %322, %323 : vector<2x32xf32>
    %325 = arith.truncf %324 : vector<2x32xf32> to vector<2x32xbf16>
    %c0_83 = arith.constant 0 : index
    %c0_84 = arith.constant 0 : index
    %326 = vector.load %arg8[%c0_83, %c0_84] : memref<32x32xbf16, #tpu.memory_space<vmem>>, vector<32x32xbf16>
    %cst_85 = arith.constant dense<0.000000e+00> : vector<2x32xf32>
    %327 = tpu.matmul %325, %326, %cst_85 {dimension_numbers = #tpu.dot_dimension_numbers<[1], [0], [0], [1], [0, 0, 1, 1], [], []>} : vector<2x32xbf16>, vector<32x32xbf16>, vector<2x32xf32> -> vector<2x32xf32>
    %c0_86 = arith.constant 0 : index
    %c0_87 = arith.constant 0 : index
    %328 = vector.load %arg9[%c0_86, %c0_87] : memref<1x32xf32, #tpu.memory_space<vmem>>, vector<1x32xf32>
    %329 = vector.broadcast %328 : vector<1x32xf32> to vector<2x32xf32>
    %330 = arith.addf %327, %329 : vector<2x32xf32>
    %cst_88 = arith.constant 0.000000e+00 : f32
    %331 = vector.broadcast %cst_88 : f32 to vector<2x32xf32>
    %332 = arith.maximumf %330, %331 : vector<2x32xf32>
    %333 = arith.truncf %332 : vector<2x32xf32> to vector<2x32xbf16>
    %c0_89 = arith.constant 0 : index
    %c0_90 = arith.constant 0 : index
    %334 = vector.load %arg10[%c0_89, %c0_90] : memref<32x32xbf16, #tpu.memory_space<vmem>>, vector<32x32xbf16>
    %cst_91 = arith.constant dense<0.000000e+00> : vector<2x32xf32>
    %335 = tpu.matmul %333, %334, %cst_91 {dimension_numbers = #tpu.dot_dimension_numbers<[1], [0], [0], [1], [0, 0, 1, 1], [], []>} : vector<2x32xbf16>, vector<32x32xbf16>, vector<2x32xf32> -> vector<2x32xf32>
    %c0_92 = arith.constant 0 : index
    %c0_93 = arith.constant 0 : index
    %336 = vector.load %arg11[%c0_92, %c0_93] : memref<1x32xf32, #tpu.memory_space<vmem>>, vector<1x32xf32>
    %337 = vector.broadcast %336 : vector<1x32xf32> to vector<2x32xf32>
    %338 = arith.addf %335, %337 : vector<2x32xf32>
    %339 = tpu.concatenate %332, %338 in 1 : vector<2x32xf32>, vector<2x32xf32> -> vector<2x64xf32>
    %c0_94 = arith.constant 0 : index
    %c0_95 = arith.constant 0 : index
    %340 = vector.load %arg12[%c0_94, %c0_95] : memref<2x64xf32, #tpu.memory_space<vmem>>, vector<2x64xf32>
    tpu.vector_store %arg12[%c0_94, %c0_95], %339 {strides = array<i32>} : memref<2x64xf32, #tpu.memory_space<vmem>>, vector<2x64xf32>,
    return
  }
}

</mosaic_0001>

<bundles_post_ra>
// kernel: encoder_forward.1
= control target key start
LH: loop header
LB: loop body
LE: loop exit
PB: predicated region body
PF: predicated region fallthrough
CT: control target
= control target key end

     0   :  { %17 = vsyncpa [#allocation3], 0  ;;  %s3004_s0 = inlined_call_operand.vmem [shape: s32[2,8], index: 0, kind: input, shape index: {}]   ;;  %s3005_s1 = inlined_call_operand.vmem [shape: f32[8,2,8], index: 1, kind: input, shape index: {}]   ;;  %s3006_s2 = inlined_call_operand.vmem [shape: bf16[16,256], index: 2, kind: input, shape index: {}]   ;;  %s3007_s3 = inlined_call_operand.hbm [shape: bf16[8,256], index: 3, kind: input, shape index: {}]   ;;  %s3008_s4 = inlined_call_operand.vmem [shape: bf16[64,256], index: 4, kind: input, shape index: {}]   ;;  %s3009_s5 = inlined_call_operand.hbm [shape: f32[1,256], index: 5, kind: input, shape index: {}]   ;;  %s3010_s6 = inlined_call_operand.vmem [shape: bf16[64,32], index: 6, kind: input, shape index: {}]   ;;  %s3011_s7 = inlined_call_operand.hbm [shape: f32[1,32], index: 7, kind: input, shape index: {}]   ;;  %s3012_s8 = inlined_call_operand.vmem [shape: bf16[32,32], index: 8, kind: input, shape index: {}]   ;;  %s3013_s9 = inlined_call_operand.hbm [shape: f32[1,32], index: 9, kind: input, shape index: {}]   ;;  %s3014_s10 = inlined_call_operand.hbm [shape: bf16[32,32], index: 10, kind: input, shape index: {}]   ;;  %s3015_s11 = inlined_call_operand.hbm [shape: f32[1,32], index: 11, kind: input, shape index: {}]   ;;  %s3016_s12 = inlined_call_operand.vmem [shape: f32[2,64], index: 12, kind: output, shape index: {}]  }
   0x1   :  { %18 = vsyncpa [#allocation5], 0 }
   0x2   :  { %19 = vsyncpa [#allocation8], 0 }
   0x3   :  { %20 = vsyncpa [#allocation11], 0  ;;  %s2289_s21 = smov [#allocation4]   ;;  %s2290_s23 = smov [#allocation7]  }
   0x4   :  { %s45_s22 = sshll.u32 %s2289_s21, 4  ;;  %s69_s24 = sshll.u32 %s2290_s23, 4  ;;  %s46_s22 = int_to_ptr.vmem [resolvable:$true] %s45_s22  ;;  %s70_s24 = int_to_ptr.vmem [resolvable:$true] %s69_s24 }
   0x5   :  { %s2149_s27 = scalar_lea.hbm %s3009_s5, 32 }
   0x6   :  { %p2150_p0 = scmp.ne.s32.totalorder %s3009_s5, %s2149_s27  ;;  %p2153_p1 = scmp.lt.u32.totalorder %s2149_s27, %s3009_s5 }
   0x8   :  { %p2155_p2 = pnand %p2153_p1, %p2150_p0 }
   0xa   :  { %2158 = shalt.err (!%p2155_p2)
}
   0xb   :  { %s2159_s14 = scalar_lea.vmem %s46_s22, 32  ;;  %p2164_p4 = scmp.lt.s32.totalorder %s46_s22, %s46_s22 }
   0xc   :  { %p2160_p3 = scmp.ne.s32.totalorder %s46_s22, %s2159_s14  ;;  %p2165_p5 = scmp.lt.s32.totalorder %s2159_s14, %s2159_s14 }
   0xe   :  { %p2166_p6 = por %p2165_p5, %p2164_p4 }
  0x10   :  { %p2167_p7 = pnand %p2166_p6, %p2160_p3 }
  0x12   :  { %2170 = shalt.err (!%p2167_p7)
}
  0x13   :  { %48 = dma.hbm_to_vmem [thread:$0]  %s3009_s5, 32, %s46_s22, [#allocation5]  }
  0x14   :  { %s2171_s19 = scalar_lea.hbm %s3013_s9, 16 }
  0x15   :  { %p2172_p8 = scmp.ne.s32.totalorder %s3013_s9, %s2171_s19  ;;  %p2175_p9 = scmp.lt.u32.totalorder %s2171_s19, %s3013_s9 }
  0x17   :  { %p2177_p10 = pnand %p2175_p9, %p2172_p8 }
  0x19   :  { %2180 = shalt.err (!%p2177_p10)
}
  0x1a   :  { %s2181_s26 = scalar_lea.vmem %s70_s24, 16  ;;  %s2185_s27 = scalar_lea.vmem %s70_s24, 32 }
  0x1b   :  { %p2182_p11 = scmp.ne.s32.totalorder %s70_s24, %s2181_s26  ;;  %p2186_p12 = scmp.lt.s32.totalorder %s70_s24, %s70_s24 }
  0x1c   :  { %p2187_p13 = scmp.lt.s32.totalorder %s2185_s27, %s2181_s26 }
  0x1e   :  { %p2188_p0 = por %p2187_p13, %p2186_p12 }
  0x20   :  { %p2189_p1 = pnand %p2188_p0, %p2182_p11 }
  0x22   :  { %2192 = shalt.err (!%p2189_p1)
}
  0x23   :  { %72 = dma.hbm_to_vmem [thread:$0]  %s3013_s9, 16, %s70_s24, [#allocation8]  }
  0x24   :  { %s2291_s28 = smov [#allocation2]   ;;  %s2292_s30 = smov [#allocation6]  }
  0x25   :  { %s33_s29 = sshll.u32 %s2291_s28, 4  ;;  %s57_s13 = sshll.u32 %s2292_s30, 4  ;;  %s34_s29 = int_to_ptr.vmem [resolvable:$true] %s33_s29  ;;  %s58_s13 = int_to_ptr.vmem [resolvable:$true] %s57_s13 }
  0x26   :  { %s2193_s16 = scalar_lea.hbm %s3007_s3, 128 }
  0x27   :  { %p2194_p2 = scmp.ne.s32.totalorder %s3007_s3, %s2193_s16  ;;  %p2197_p3 = scmp.lt.u32.totalorder %s2193_s16, %s3007_s3 }
  0x29   :  { %p2199_p4 = pnand %p2197_p3, %p2194_p2 }
  0x2b   :  { %2202 = shalt.err (!%p2199_p4)
}
  0x2c   :  { %s2203_s9 = scalar_lea.vmem %s34_s29, 128  ;;  %p2208_p6 = scmp.lt.s32.totalorder %s34_s29, %s34_s29 }
  0x2d   :  { %p2204_p5 = scmp.ne.s32.totalorder %s34_s29, %s2203_s9  ;;  %p2209_p7 = scmp.lt.s32.totalorder %s2203_s9, %s2203_s9 }
  0x2f   :  { %p2210_p8 = por %p2209_p7, %p2208_p6 }
  0x31   :  { %p2211_p9 = pnand %p2210_p8, %p2204_p5 }
  0x33   :  { %2214 = shalt.err (!%p2211_p9)
}
  0x34   :  { %36 = dma.hbm_to_vmem [thread:$0]  %s3007_s3, 128, %s34_s29, [#allocation3]  }
  0x35   :  { %s2215_s26 = scalar_lea.hbm %s3011_s7, 16 }
  0x36   :  { %p2216_p10 = scmp.ne.s32.totalorder %s3011_s7, %s2215_s26  ;;  %p2219_p11 = scmp.lt.u32.totalorder %s2215_s26, %s3011_s7 }
  0x38   :  { %p2221_p12 = pnand %p2219_p11, %p2216_p10 }
  0x3a   :  { %2224 = shalt.err (!%p2221_p12)
}
  0x3b   :  { %s2225_s30 = scalar_lea.vmem %s58_s13, 16  ;;  %s2229_s14 = scalar_lea.vmem %s58_s13, 32 }
  0x3c   :  { %p2226_p13 = scmp.ne.s32.totalorder %s58_s13, %s2225_s30  ;;  %p2230_p0 = scmp.lt.s32.totalorder %s58_s13, %s58_s13 }
  0x3d   :  { %p2231_p1 = scmp.lt.s32.totalorder %s2229_s14, %s2225_s30 }
  0x3f   :  { %p2232_p2 = por %p2231_p1, %p2230_p0 }
  0x41   :  { %p2233_p3 = pnand %p2232_p2, %p2226_p13 }
  0x43   :  { %2236 = shalt.err (!%p2233_p3)
}
  0x44   :  { %60 = dma.hbm_to_vmem [thread:$0]  %s3011_s7, 16, %s58_s13, [#allocation5]  }
  0x45   :  { %s2293_s15 = smov [#allocation9]   ;;  %s2237_s19 = scalar_lea.hbm %s3014_s10, 256 }
  0x46   :  { %s78_s16 = sshll.u32 %s2293_s15, 4  ;;  %p2238_p4 = scmp.ne.s32.totalorder %s3014_s10, %s2237_s19  ;;  %s79_s16 = int_to_ptr.vmem [resolvable:$true] %s78_s16 }
  0x47   :  { %p2241_p5 = scmp.lt.u32.totalorder %s2237_s19, %s3014_s10 }
  0x49   :  { %p2243_p6 = pnand %p2241_p5, %p2238_p4 }
  0x4b   :  { %2246 = shalt.err (!%p2243_p6)
}
  0x4c   :  { %s2247_s23 = scalar_lea.vmem %s79_s16, 256  ;;  %p2252_p8 = scmp.lt.s32.totalorder %s79_s16, %s79_s16 }
  0x4d   :  { %p2248_p7 = scmp.ne.s32.totalorder %s79_s16, %s2247_s23  ;;  %p2253_p9 = scmp.lt.s32.totalorder %s2247_s23, %s2247_s23 }
  0x4f   :  { %p2254_p10 = por %p2253_p9, %p2252_p8 }
  0x51   :  { %p2255_p11 = pnand %p2254_p10, %p2248_p7 }
  0x53   :  { %2258 = shalt.err (!%p2255_p11)
}
  0x54   :  { %s2294_s7 = smov 64   ;;  %s2295_s13 = smov 4  }
  0x55   :  { %84 = dma.hbm_to_vmem [thread:$0]  %s3014_s10, 256, %s79_s16, [#allocation8], %s2294_s7, %s2294_s7, %s2295_s13  }
  0x56   :  { %s2296_s27 = smov [#allocation10]   ;;  %s2259_s30 = scalar_lea.hbm %s3015_s11, 16 }
  0x57   :  { %s91_s5 = sshll.u32 %s2296_s27, 4  ;;  %p2260_p12 = scmp.ne.s32.totalorder %s3015_s11, %s2259_s30  ;;  %s92_s5 = int_to_ptr.vmem [resolvable:$true] %s91_s5 }
  0x58   :  { %p2263_p13 = scmp.lt.u32.totalorder %s2259_s30, %s3015_s11 }
  0x5a   :  { %p2265_p0 = pnand %p2263_p13, %p2260_p12 }
  0x5c   :  { %2268 = shalt.err (!%p2265_p0)
}
  0x5d   :  { %s2269_s17 = scalar_lea.vmem %s92_s5, 16  ;;  %s2273_s10 = scalar_lea.vmem %s92_s5, 32 }
  0x5e   :  { %p2270_p1 = scmp.ne.s32.totalorder %s92_s5, %s2269_s17  ;;  %p2274_p2 = scmp.lt.s32.totalorder %s92_s5, %s92_s5 }
  0x5f   :  { %p2275_p3 = scmp.lt.s32.totalorder %s2273_s10, %s2269_s17 }
  0x61   :  { %p2276_p4 = por %p2275_p3, %p2274_p2 }
  0x63   :  { %p2277_p5 = pnand %p2276_p4, %p2270_p1 }
  0x65   :  { %2280 = shalt.err (!%p2277_p5)
}
  0x66   :  { %94 = dma.hbm_to_vmem [thread:$0]  %s3015_s11, 16, %s92_s5, [#allocation11]  }
  0x67   :  { %2281 = dma.done.wait [#allocation3], 128  }
  0x68   :  { %2282 = vsyncadd [#allocation3], 4294967168 }
  0x69   :  { %2283 = dma.done.wait [#allocation5], 48  }
  0x6a   :  { %2284 = vsyncadd [#allocation5], 4294967248 }
  0x6b   :  { %2285 = dma.done.wait [#allocation8], 272  }
  0x6c   :  { %2286 = vsyncadd [#allocation8], 4294967024 }
  0x6d   :  { %2287 = dma.done.wait [#allocation11], 16  }
  0x6e   :  { %2288 = vsyncadd [#allocation11], 4294967280  ;;  %v2297_v0 = vmov 0   ;;  %v2298_v1 = vmov 2   ;;  %v114_v2 = vld [vmem:[%s3004_s0] sm:$0x3]  ;;  %v127_v39 = vlaneseq }
  0x6f   :  { %2019 = vset.pattern.permute.xlu0 %v2297_v0  ;;  %2021 = vset.pattern.permute.xlu1 %v2298_v1  ;;  %v117_v3 = vld [vmem:[#allocation2] sm:$0xff]  ;;  %vm146_vm0 = vcmask 1043456   ;;  %vm142_vm1 = vcmask 64512   ;;  %v2299_v11 = vmov 1   ;;  %v2300_v12 = vmov 3  }
  0x70   :  { %185 = vmatprep.mubr.bf16.mxu0 %v2297_v0  ;;  %240 = vmatprep.mubr.bf16.mxu1 %v2297_v0  ;;  %v135_v4 = vld [vmem:[%s3005_s1] sm:$0x3]  ;;  %v2456_v5 = vcombine.high %v117_v3, %v117_v3  ;;  %v1881_v6 = vcombine.low %v117_v3, %v117_v3  ;;  %v2461_v7 = vld [vmem:[%s3006_s2 + $0x4] ss:$8 sps:$4 sm:$0xff]   ;;  %v1888_v13 = vld [vmem:[%s3005_s1 + $0x2] sm:$0x3] }
  0x71   :  { %130 = vperm.xlu0 %2019, %v114_v2   ;;  %362 = vperm.xlu1 %2021, %v114_v2   ;;  %v2466_v8 = vld [vmem:[%s3006_s2] ss:$8 sps:$4 sm:$0xff]   ;;  %v136_v10 = vpack.c.bf16 %v135_v4, %v135_v4  ;;  %v2301_v14 = vmov 4   ;;  %v2302_v15 = vmov 5   ;;  %v270_v16 = vpack.c.bf16 %v1888_v13, %v1888_v13  ;;  %v1892_v18 = vld [vmem:[%s3005_s1 + $0x4] sm:$0x3] }
  0x72   :  { %1883 = vmatprep.subr.msk.bf16.mxu0 %vm146_vm0, %v2456_v5  ;;  %v2471_v9 = vsel %vm146_vm0, %v1881_v6, 0  ;;  %208 = vmatprep.subr.bf16.mxu1 %v2461_v7  ;;  %v2303_v17 = vmov 6   ;;  %v2304_v19 = vmov 7   ;;  %v369_v20 = vpack.c.bf16 %v1892_v18, %v1892_v18  ;;  %v1896_v21 = vld [vmem:[%s3005_s1 + $0x6] sm:$0x3] }
  0x73   :  { %154 = vmatpush1.bf16.msra.mxu0 %v2471_v9  ;;  %209 = vmatpush1.bf16.msra.mxu1 %v2466_v8  ;;  %v468_v22 = vpack.c.bf16 %v1896_v21, %v1896_v21  ;;  %v1900_v23 = vld [vmem:[%s3005_s1 + $0x8] sm:$0x3]  ;;  %v1904_v25 = vld [vmem:[%s3005_s1 + $0xa] sm:$0x3]  ;;  %v1908_v27 = vld [vmem:[%s3005_s1 + $0xc] sm:$0x3] }
  0x74   :  { %1889 = vmatprep.subr.msk.bf16.mxu0 %vm146_vm0, %v2456_v5  ;;  %318 = vmatprep.subr.bf16.mxu1 %v2461_v7  ;;  %v567_v24 = vpack.c.bf16 %v1900_v23, %v1900_v23  ;;  %v666_v26 = vpack.c.bf16 %v1904_v25, %v1904_v25  ;;  %v765_v28 = vpack.c.bf16 %v1908_v27, %v1908_v27  ;;  %v2530_v29 = vld [vmem:[%s3008_s4 + $0x4] ss:$8 sps:$4 sm:$0xff]   ;;  %v2542_v32 = vld [vmem:[%s3008_s4] ss:$8 sps:$4 sm:$0xff]   ;;  %v2547_v33 = vld [vmem:[%s3008_s4 + $0x14] ss:$8 sps:$4 sm:$0xff]  }
  0x75   :  { %2020 = vset.pattern.permute.xlu0 %v2299_v11  ;;  %2022 = vset.pattern.permute.xlu1 %v2300_v12  ;;  %v1912_v30 = vld [vmem:[%s3005_s1 + $0xe] sm:$0x3]  ;;  %v2554_v34 = vld [vmem:[%s3008_s4 + $0x10] ss:$8 sps:$4 sm:$0xff]   ;;  %v2567_v36 = vld [vmem:[%s3008_s4 + $0x20] ss:$8 sps:$4 sm:$0xff]  }
  0x76   :  { %263 = vperm.xlu0 %2020, %v114_v2   ;;  %461 = vperm.xlu1 %2022, %v114_v2   ;;  %v864_v31 = vpack.c.bf16 %v1912_v30, %v1912_v30  ;;  %v2561_v35 = vld [vmem:[%s3008_s4 + $0x24] ss:$8 sps:$4 sm:$0xff]   ;;  %v2573_v37 = vld [vmem:[%s3008_s4 + $0x34] ss:$8 sps:$4 sm:$0xff]   ;;  %v2579_v38 = vld [vmem:[%s3008_s4 + $0x30] ss:$8 sps:$4 sm:$0xff]  }
  0x77   :  { %1884 = vmatmul.mubr.msk.bf16.vlgmr.msra.gmra.mrb[0].mxu0 %vm142_vm1, %v136_v10  ;;  %v2595_v40 = vand.u32 127, %v127_v39  ;;  %v2305_v42 = vmov 0.0   ;;  %vm204_vm3 = vcmask 130048  }
  0x78   :  { %275 = vmatpush1.bf16.msra.mxu0 %v2471_v9  ;;  %306 = vmatprep.mubr.bf16.mxu0 %v2297_v0 }
  0x79   :  { %1893 = vmatprep.subr.msk.bf16.mxu0 %vm146_vm0, %v2456_v5  ;;  %vm962_vm11 = vcmp.ge.s32.totalorder %v2595_v40, 32  ;;  %vm964_vm12 = vcmp.lt.s32.totalorder %v2595_v40, 64 }
  0x7a   :  { %2023 = vset.pattern.permute.xlu1 %v2301_v14  ;;  %2024 = vset.pattern.permute.xlu0 %v2302_v15  ;;  %vm966_vm15 = vmand %vm962_vm11, %vm964_vm12 }
  0x7b   :  { %560 = vperm.xlu1 %2023, %v114_v2   ;;  %659 = vperm.xlu0 %2024, %v114_v2  }
  0x7f   :  { %2025 = vset.pattern.permute.xlu1 %v2303_v17  ;;  %1890 = vmatmul.mubr.msk.bf16.vlgmr.msra.gmra.mrb[4].mxu0 %vm142_vm1, %v270_v16 }
  0x80   :  { %758 = vperm.xlu1 %2025, %v114_v2   ;;  %374 = vmatpush1.bf16.msra.mxu0 %v2471_v9 }
  0x81   :  { %405 = vmatprep.mubr.bf16.mxu0 %v2297_v0  ;;  %1897 = vmatprep.subr.msk.bf16.mxu0 %vm146_vm0, %v2456_v5 }
  0x82   :  { %2027 = vset.pattern.permute.xlu0 %v2304_v19 }
  0x84   :  { %2026 = vset.pattern.permute.xlu1 %v2304_v19 }
  0x85   :  { %857 = vperm.xlu1 %2026, %v114_v2  }
  0x87   :  { %1894 = vmatmul.mubr.msk.bf16.vlgmr.msra.gmra.mrb[8].mxu0 %vm142_vm1, %v369_v20 }
  0x88   :  { %473 = vmatpush1.bf16.msra.mxu0 %v2471_v9  ;;  %504 = vmatprep.mubr.bf16.mxu0 %v2297_v0 }
  0x89   :  { %1901 = vmatprep.subr.msk.bf16.mxu0 %vm146_vm0, %v2456_v5 }
  0x8f   :  { %1898 = vmatmul.mubr.msk.bf16.vlgmr.msra.gmra.mrb[12].mxu0 %vm142_vm1, %v468_v22 }
  0x90   :  { %572 = vmatpush1.bf16.msra.mxu0 %v2471_v9  ;;  %603 = vmatprep.mubr.bf16.mxu0 %v2297_v0 }
  0x91   :  { %1905 = vmatprep.subr.msk.bf16.mxu0 %vm146_vm0, %v2456_v5 }
  0x97   :  { %1902 = vmatmul.mubr.msk.bf16.vlgmr.msra.gmra.mrb[16].mxu0 %vm142_vm1, %v567_v24 }
  0x98   :  { %671 = vmatpush1.bf16.msra.mxu0 %v2471_v9  ;;  %702 = vmatprep.mubr.bf16.mxu0 %v2297_v0 }
  0x99   :  { %1909 = vmatprep.subr.msk.bf16.mxu0 %vm146_vm0, %v2456_v5 }
  0x9f   :  { %1906 = vmatmul.mubr.msk.bf16.vlgmr.msra.gmra.mrb[20].mxu0 %vm142_vm1, %v666_v26 }
  0xa0   :  { %770 = vmatpush1.bf16.msra.mxu0 %v2471_v9  ;;  %801 = vmatprep.mubr.bf16.mxu0 %v2297_v0 }
  0xa1   :  { %1913 = vmatprep.subr.msk.bf16.mxu0 %vm146_vm0, %v2456_v5  ;;  %vm968_vm0 = vcmp.ge.s32.totalorder %v2595_v40, 96 }
  0xa7   :  { %1910 = vmatmul.mubr.msk.bf16.vlgmr.msra.gmra.mrb[24].mxu0 %vm142_vm1, %v765_v28 }
  0xa8   :  { %869 = vmatpush1.bf16.msra.mxu0 %v2471_v9  ;;  %900 = vmatprep.mubr.bf16.mxu0 %v2297_v0 }
  0xa9   :  { %1036 = vmatprep.subr.bf16.mxu0 %v2530_v29 }
  0xaf   :  { %1914 = vmatmul.mubr.msk.bf16.vlgmr.msra.gmra.mrb[28].mxu0 %vm142_vm1, %v864_v31 }
  0xb0   :  { %1037 = vmatpush1.bf16.msra.mxu0 %v2542_v32  ;;  %1068 = vmatprep.mubr.bf16.mxu0 %v2297_v0 }
  0xb1   :  { %1038 = vmatprep.subr.bf16.mxu0 %v2547_v33 }
  0xb4   :  { %1039 = vmatpush1.bf16.msra.mxu0 %v2554_v34 }
  0xb5   :  { %1040 = vmatprep.subr.bf16.mxu0 %v2561_v35 }
  0xb8   :  { %1041 = vmatpush1.bf16.msra.mxu0 %v2567_v36 }
  0xb9   :  { %1042 = vmatprep.subr.bf16.mxu0 %v2573_v37 }
  0xbc   :  { %1043 = vmatpush1.bf16.msra.mxu0 %v2579_v38 }
  0xbd   :  { %1190 = vmatprep.subr.bf16.mxu0 %v2530_v29 }
  0xbf   :  { %1069 = vmatmul.mubr.bf16.vlgmr.msra.gmra.mrb[32].mxu0 %v2297_v0 }
  0xc0   :  { %1191 = vmatpush1.bf16.msra.mxu0 %v2542_v32  ;;  %1222 = vmatprep.mubr.bf16.mxu0 %v2297_v0 }
  0xc1   :  { %1192 = vmatprep.subr.bf16.mxu0 %v2547_v33 }
  0xc4   :  { %1193 = vmatpush1.bf16.msra.mxu0 %v2554_v34 }
  0xc5   :  { %1194 = vmatprep.subr.bf16.mxu0 %v2561_v35 }
  0xc8   :  { %1195 = vmatpush1.bf16.msra.mxu0 %v2567_v36 }
  0xc9   :  { %1196 = vmatprep.subr.bf16.mxu0 %v2573_v37 }
  0xcc   :  { %1197 = vmatpush1.bf16.msra.mxu0 %v2579_v38 }
  0xcd   :  { %1344 = vmatprep.subr.bf16.mxu0 %v2530_v29 }
  0xf0   :  { %v131_v41 = vpop.permute.xlu0 %130  ;;  %v363_v47 = vpop.permute.xlu1 %362 }
  0xf1   :  { %vm132_vm2 = vcmp.eq.s32.totalorder %v2595_v40, %v131_v41  ;;  %vm364_vm5 = vcmp.eq.s32.totalorder %v2595_v40, %v363_v47 }
  0xf2   :  { %v133_v43 = vsel %vm132_vm2, 1.0, %v2305_v42  ;;  %v365_v49 = vsel %vm364_vm5, 1.0, %v2305_v42  ;;  %vm1032_vm5 = vcmask 523264  }
  0xf3   :  { %v134_v44 = vpack.c.bf16 %v133_v43, %v133_v43  ;;  %v366_v51 = vpack.c.bf16 %v365_v49, %v365_v49 }
  0xf5   :  { %1887 = vmatmul.mubr.msk.bf16.vlgmr.msra.gmra.mrb[0].mxu1 %vm204_vm3, %v134_v44  ;;  %v264_v45 = vpop.permute.xlu0 %263  ;;  %v462_v50 = vpop.permute.xlu1 %461 }
  0xf6   :  { %319 = vmatpush1.bf16.msra.mxu1 %v2466_v8  ;;  %vm265_vm4 = vcmp.eq.s32.totalorder %v2595_v40, %v264_v45  ;;  %350 = vmatprep.mubr.bf16.mxu1 %v2297_v0  ;;  %vm463_vm6 = vcmp.eq.s32.totalorder %v2595_v40, %v462_v50 }
  0xf7   :  { %v266_v46 = vsel %vm265_vm4, 1.0, %v2305_v42  ;;  %417 = vmatprep.subr.bf16.mxu1 %v2461_v7  ;;  %v464_v52 = vsel %vm463_vm6, 1.0, %v2305_v42  ;;  %vm2306_vm6 = vmmov 0  }
  0xf8   :  { %v267_v48 = vpack.c.bf16 %v266_v46, %v266_v46  ;;  %v465_v54 = vpack.c.bf16 %v464_v52, %v464_v52  ;;  %v251_v52 = vshrl.u32 %v127_v39, 7 }
  0xfa   :  { %v561_v53 = vpop.permute.xlu1 %560  ;;  %v660_v56 = vpop.permute.xlu0 %659 }
  0xfb   :  { %vm562_vm7 = vcmp.eq.s32.totalorder %v2595_v40, %v561_v53  ;;  %vm661_vm8 = vcmp.eq.s32.totalorder %v2595_v40, %v660_v56 }
  0xfc   :  { %v563_v55 = vsel %vm562_vm7, 1.0, %v2305_v42  ;;  %v662_v58 = vsel %vm661_vm8, 1.0, %v2305_v42  ;;  %vm1754_vm7 = vcmask 261120   ;;  %vm1871_vm8 = vcmask 517120  }
  0xfd   :  { %1891 = vmatmul.mubr.msk.bf16.vlgmr.msra.gmra.mrb[4].mxu1 %vm204_vm3, %v267_v48  ;;  %v564_v57 = vpack.c.bf16 %v563_v55, %v563_v55  ;;  %v663_v60 = vpack.c.bf16 %v662_v58, %v662_v58  ;;  %v126_v58 = vld [vmem:[#allocation4] sm:$0x3] }
  0xfe   :  { %418 = vmatpush1.bf16.msra.mxu1 %v2466_v8  ;;  %449 = vmatprep.mubr.bf16.mxu1 %v2297_v0 }
  0xff   :  { %516 = vmatprep.subr.bf16.mxu1 %v2461_v7  ;;  %v759_v59 = vpop.permute.xlu1 %758 }
 0x100   :  { %vm760_vm9 = vcmp.eq.s32.totalorder %v2595_v40, %v759_v59  ;;  %v256_v59 = vsub.s32 1, %v251_v52 }
 0x101   :  { %v761_v61 = vsel %vm760_vm9, 1.0, %v2305_v42 }
 0x102   :  { %v762_v63 = vpack.c.bf16 %v761_v61, %v761_v61 }
 0x104   :  { %v858_v62 = vpop.permute.xlu1 %857 }
 0x105   :  { %1895 = vmatmul.mubr.msk.bf16.vlgmr.msra.gmra.mrb[8].mxu1 %vm204_vm3, %v366_v51  ;;  %vm859_vm10 = vcmp.eq.s32.totalorder %v2595_v40, %v858_v62 }
 0x106   :  { %517 = vmatpush1.bf16.msra.mxu1 %v2466_v8  ;;  %548 = vmatprep.mubr.bf16.mxu1 %v2297_v0  ;;  %v860_v1 = vsel %vm859_vm10, 1.0, %v2305_v42 }
 0x107   :  { %615 = vmatprep.subr.bf16.mxu1 %v2461_v7  ;;  %v861_v2 = vpack.c.bf16 %v860_v1, %v860_v1  ;;  %v2678_v1 = vrot.slane %v126_v58, %v256_v59 }
 0x10d   :  { %1899 = vmatmul.mubr.msk.bf16.vlgmr.msra.gmra.mrb[12].mxu1 %vm204_vm3, %v465_v54 }
 0x10e   :  { %616 = vmatpush1.bf16.msra.mxu1 %v2466_v8  ;;  %647 = vmatprep.mubr.bf16.mxu1 %v2297_v0 }
 0x10f   :  { %714 = vmatprep.subr.bf16.mxu1 %v2461_v7 }
 0x115   :  { %1903 = vmatmul.mubr.msk.bf16.vlgmr.msra.gmra.mrb[16].mxu1 %vm204_vm3, %v564_v57  ;;  %v252_v57 = vsub.s32 0, %v251_v52 }
 0x116   :  { %715 = vmatpush1.bf16.msra.mxu1 %v2466_v8  ;;  %746 = vmatprep.mubr.bf16.mxu1 %v2297_v0 }
 0x117   :  { %813 = vmatprep.subr.bf16.mxu1 %v2461_v7  ;;  %v2676_v61 = vrot.slane %v126_v58, %v252_v57 }
 0x11d   :  { %1907 = vmatmul.mubr.msk.bf16.vlgmr.msra.gmra.mrb[20].mxu1 %vm204_vm3, %v663_v60 }
 0x11e   :  { %814 = vmatpush1.bf16.msra.mxu1 %v2466_v8  ;;  %845 = vmatprep.mubr.bf16.mxu1 %v2297_v0 }
 0x11f   :  { %912 = vmatprep.subr.bf16.mxu1 %v2461_v7 }
 0x125   :  { %1911 = vmatmul.mubr.msk.bf16.vlgmr.msra.gmra.mrb[24].mxu1 %vm204_vm3, %v762_v63 }
 0x126   :  { %913 = vmatpush1.bf16.msra.mxu1 %v2466_v8  ;;  %944 = vmatprep.mubr.bf16.mxu1 %v2297_v0 }
 0x127   :  { %1113 = vmatprep.subr.bf16.mxu1 %v2530_v29 }
 0x12d   :  { %1915 = vmatmul.mubr.msk.bf16.vlgmr.msra.gmra.mrb[28].mxu1 %vm204_vm3, %v861_v2  ;;  %vm2711_vm3 = vmor %vm966_vm15, %vm968_vm0 }
 0x12e   :  { %1114 = vmatpush1.bf16.msra.mxu1 %v2542_v32  ;;  %1145 = vmatprep.mubr.bf16.mxu1 %v2297_v0 }
 0x12f   :  { %1115 = vmatprep.subr.bf16.mxu1 %v2547_v33 }
 0x132   :  { %1116 = vmatpush1.bf16.msra.mxu1 %v2554_v34 }
 0x133   :  { %1117 = vmatprep.subr.bf16.mxu1 %v2561_v35 }
 0x136   :  { %1118 = vmatpush1.bf16.msra.mxu1 %v2567_v36 }
 0x137   :  { %1119 = vmatprep.subr.bf16.mxu1 %v2573_v37 }
 0x13a   :  { %1120 = vmatpush1.bf16.msra.mxu1 %v2579_v38 }
 0x13b   :  { %1267 = vmatprep.subr.bf16.mxu1 %v2530_v29 }
 0x14a   :  { %v187_v3 = vpop.f32.mrb[0].mxu0 }
 0x14b   :  { %v189_v4 = vpop.f32.mrb[1].mxu0 }
 0x14c   :  { %v191_v5 = vpop.f32.mrb[2].mxu0 }
 0x14d   :  { %v192_v6 = vpop.f32.mrb[3].mxu0 }
 0x152   :  { %v308_v7 = vpop.f32.mrb[4].mxu0 }
 0x153   :  { %v310_v8 = vpop.f32.mrb[5].mxu0 }
 0x154   :  { %v312_v9 = vpop.f32.mrb[6].mxu0 }
 0x155   :  { %v313_v10 = vpop.f32.mrb[7].mxu0 }
 0x15a   :  { %v407_v11 = vpop.f32.mrb[8].mxu0 }
 0x15b   :  { %v409_v12 = vpop.f32.mrb[9].mxu0 }
 0x15c   :  { %v411_v13 = vpop.f32.mrb[10].mxu0 }
 0x15d   :  { %v412_v14 = vpop.f32.mrb[11].mxu0 }
 0x162   :  { %v506_v15 = vpop.f32.mrb[12].mxu0 }
 0x163   :  { %v508_v16 = vpop.f32.mrb[13].mxu0 }
 0x164   :  { %v510_v17 = vpop.f32.mrb[14].mxu0 }
 0x165   :  { %v511_v18 = vpop.f32.mrb[15].mxu0 }
 0x16a   :  { %v2651_v19 = vpop.f32.mrb[16].mxu0 }
 0x16b   :  { %v2653_v20 = vpop.f32.mrb[17].mxu0 }
 0x16c   :  { %v609_v21 = vpop.f32.mrb[18].mxu0 }
 0x16d   :  { %v610_v22 = vpop.f32.mrb[19].mxu0 }
 0x172   :  { %v2655_v23 = vpop.f32.mrb[20].mxu0 }
 0x173   :  { %v2657_v24 = vpop.f32.mrb[21].mxu0 }
 0x174   :  { %v708_v25 = vpop.f32.mrb[22].mxu0 }
 0x175   :  { %v709_v26 = vpop.f32.mrb[23].mxu0  ;;  %v2693_v25 = vadd.s32 128, %v2595_v40 }
 0x177   :  { %vm959_vm13 = vcmp.lt.s32.totalorder %v2693_v25, 192  ;;  %vm975_vm14 = vcmp.ge.s32.totalorder %v2693_v25, 160  ;;  %vm979_vm2 = vcmp.ge.s32.totalorder %v2693_v25, 224  ;;  %v2046_v25 = vld [vmem:[%s3010_s6 + $0x8] sm:$0xff]  }
 0x178   :  { %vm977_vm1 = vmand %vm975_vm14, %vm959_vm13 }
 0x179   :  { %vm2718_vm4 = vmor %vm977_vm1, %vm979_vm2 }
 0x17a   :  { %v2659_v27 = vpop.f32.mrb[24].mxu0 }
 0x17b   :  { %v2661_v28 = vpop.f32.mrb[25].mxu0 }
 0x17c   :  { %v807_v30 = vpop.f32.mrb[26].mxu0 }
 0x17d   :  { %v808_v31 = vpop.f32.mrb[27].mxu0 }
 0x182   :  { %v2663_v41 = vpop.f32.mrb[28].mxu0 }
 0x183   :  { %v2665_v43 = vpop.f32.mrb[29].mxu0 }
 0x184   :  { %v906_v44 = vpop.f32.mrb[30].mxu0 }
 0x185   :  { %v907_v45 = vpop.f32.mrb[31].mxu0 }
 0x192   :  { %v2667_v46 = vpop.f32.mrb[32].mxu0 }
 0x193   :  { %v2669_v47 = vpop.f32.mrb[33].mxu0 }
 0x194   :  { %v1074_v48 = vpop.f32.mrb[34].mxu0 }
 0x195   :  { %v1075_v49 = vpop.f32.mrb[35].mxu0 }
 0x1c8   :  { %v242_v50 = vpop.f32.mrb[0].mxu1 }
 0x1c9   :  { %v2671_v51 = vadd.f32 %v242_v50, %v187_v3  ;;  %v244_v53 = vpop.f32.mrb[1].mxu1 }
 0x1ca   :  { %v2674_v54 = vadd.f32 %v244_v53, %v189_v4  ;;  %v246_v55 = vpop.f32.mrb[2].mxu1 }
 0x1cb   :  { %v247_v56 = vpop.f32.mrb[3].mxu1 }
 0x1d0   :  { %v352_v60 = vpop.f32.mrb[4].mxu1 }
 0x1d1   :  { %v353_v62 = vadd.f32 %v352_v60, %v308_v7  ;;  %v354_v63 = vpop.f32.mrb[5].mxu1 }
 0x1d2   :  { %v355_v2 = vadd.f32 %v354_v63, %v310_v8  ;;  %v356_v3 = vpop.f32.mrb[6].mxu1 }
 0x1d3   :  { %v2681_v5 = vadd.f32 %v353_v62, %v2676_v61  ;;  %v357_v39 = vpop.f32.mrb[7].mxu1 }
 0x1d4   :  { %v2684_v4 = vadd.f32 %v355_v2, %v2678_v1 }
 0x1d8   :  { %v451_v6 = vpop.f32.mrb[8].mxu1 }
 0x1d9   :  { %v452_v9 = vadd.f32 %v451_v6, %v407_v11  ;;  %v453_v10 = vpop.f32.mrb[9].mxu1 }
 0x1da   :  { %v454_v13 = vadd.f32 %v453_v10, %v409_v12  ;;  %v455_v14 = vpop.f32.mrb[10].mxu1 }
 0x1db   :  { %v2687_v17 = vadd.f32 %v452_v9, %v2676_v61  ;;  %v456_v7 = vpop.f32.mrb[11].mxu1 }
 0x1dc   :  { %v2690_v18 = vadd.f32 %v454_v13, %v2678_v1 }
 0x1e0   :  { %v550_v8 = vpop.f32.mrb[12].mxu1 }
 0x1e1   :  { %v551_v21 = vadd.f32 %v550_v8, %v506_v15  ;;  %v552_v22 = vpop.f32.mrb[13].mxu1 }
 0x1e2   :  { %v553_v26 = vadd.f32 %v552_v22, %v508_v16  ;;  %v554_v30 = vpop.f32.mrb[14].mxu1 }
 0x1e3   :  { %v2696_v11 = vadd.f32 %v551_v21, %v2676_v61  ;;  %v555_v12 = vpop.f32.mrb[15].mxu1 }
 0x1e4   :  { %v2699_v31 = vadd.f32 %v553_v26, %v2678_v1 }
 0x1e8   :  { %v649_v15 = vpop.f32.mrb[16].mxu1 }
 0x1e9   :  { %v650_v16 = vadd.f32 %v649_v15, %v2651_v19  ;;  %v651_v44 = vpop.f32.mrb[17].mxu1 }
 0x1ea   :  { %v652_v45 = vadd.f32 %v651_v44, %v2653_v20  ;;  %v653_v48 = vpop.f32.mrb[18].mxu1 }
 0x1eb   :  { %v2716_v50 = vadd.f32 %v650_v16, %v2676_v61  ;;  %v654_v40 = vpop.f32.mrb[19].mxu1  ;;  %v2793_v48 = vadd.f32 %v2676_v61, %v2671_v51 }
 0x1ec   :  { %v2723_v53 = vadd.f32 %v652_v45, %v2678_v1 }
 0x1ed   :  { %v1258_v19 = vsel %vm2711_vm3, %v2716_v50, %v2696_v11  ;;  %v1335_v20 = vsel %vm2711_vm3, %v2696_v11, %v2716_v50 }
 0x1ee   :  { %v1259_v55 = vsel %vm2718_vm4, %v2723_v53, %v2699_v31  ;;  %v1336_v56 = vsel %vm2718_vm4, %v2699_v31, %v2723_v53 }
 0x1f0   :  { %v748_v57 = vpop.f32.mrb[20].mxu1 }
 0x1f1   :  { %v749_v58 = vadd.f32 %v748_v57, %v2655_v23  ;;  %v750_v59 = vpop.f32.mrb[21].mxu1 }
 0x1f2   :  { %v751_v60 = vadd.f32 %v750_v59, %v2657_v24  ;;  %v752_v62 = vpop.f32.mrb[22].mxu1 }
 0x1f3   :  { %v2744_v63 = vadd.f32 %v749_v58, %v2676_v61  ;;  %v753_v2 = vpop.f32.mrb[23].mxu1  ;;  %v2800_v58 = vadd.f32 %v2678_v1, %v2674_v54 }
 0x1f4   :  { %v2747_v3 = vadd.f32 %v751_v60, %v2678_v1 }
 0x1f5   :  { %v1181_v39 = vsel %vm2711_vm3, %v2744_v63, %v2687_v17  ;;  %v1412_v23 = vsel %vm2711_vm3, %v2687_v17, %v2744_v63 }
 0x1f6   :  { %v1182_v24 = vsel %vm2718_vm4, %v2747_v3, %v2690_v18  ;;  %v1413_v6 = vsel %vm2718_vm4, %v2690_v18, %v2747_v3 }
 0x1f8   :  { %v847_v9 = vpop.f32.mrb[24].mxu1 }
 0x1f9   :  { %v848_v10 = vadd.f32 %v847_v9, %v2659_v27  ;;  %v849_v13 = vpop.f32.mrb[25].mxu1 }
 0x1fa   :  { %v850_v14 = vadd.f32 %v849_v13, %v2661_v28  ;;  %v851_v7 = vpop.f32.mrb[26].mxu1 }
 0x1fb   :  { %v2768_v8 = vadd.f32 %v848_v10, %v2676_v61  ;;  %v852_v21 = vpop.f32.mrb[27].mxu1 }
 0x1fc   :  { %v2771_v22 = vadd.f32 %v850_v14, %v2678_v1 }
 0x1fd   :  { %v1104_v26 = vsel %vm2711_vm3, %v2768_v8, %v2681_v5  ;;  %v1489_v27 = vsel %vm2711_vm3, %v2681_v5, %v2768_v8 }
 0x1fe   :  { %v1105_v28 = vsel %vm2718_vm4, %v2771_v22, %v2684_v4  ;;  %v1490_v30 = vsel %vm2718_vm4, %v2684_v4, %v2771_v22 }
 0x200   :  { %v946_v12 = vpop.f32.mrb[28].mxu1 }
 0x201   :  { %v947_v15 = vadd.f32 %v946_v12, %v2663_v41  ;;  %v948_v16 = vpop.f32.mrb[29].mxu1 }
 0x202   :  { %v949_v44 = vadd.f32 %v948_v16, %v2665_v43  ;;  %v950_v45 = vpop.f32.mrb[30].mxu1 }
 0x203   :  { %v2796_v40 = vadd.f32 %v947_v15, %v2676_v61  ;;  %v951_v57 = vpop.f32.mrb[31].mxu1 }
 0x204   :  { %v2803_v59 = vadd.f32 %v949_v44, %v2678_v1 }
 0x205   :  { %v990_v41 = vsel %vm2711_vm3, %v2796_v40, %v2793_v48  ;;  %v1566_v43 = vsel %vm2711_vm3, %v2793_v48, %v2796_v40 }
 0x206   :  { %v1077_v51 = vadd.f32 %v2667_v46, %v990_v41  ;;  %v991_v54 = vsel %vm2718_vm4, %v2803_v59, %v2800_v58  ;;  %v1567_v61 = vsel %vm2718_vm4, %v2800_v58, %v2803_v59 }
 0x207   :  { %v1078_v1 = vadd.f32 %v2669_v47, %v991_v54 }
 0x208   :  { %v1924_v60 = vmul.f32 -1.442695, %v1077_v51 }
 0x209   :  { %v1925_v62 = vmul.f32 -1.442695, %v1078_v1 }
 0x20a   :  { %2053 = vpow2.f32 %v1924_v60 }
 0x20b   :  { %2055 = vpow2.f32 %v1925_v62 }
 0x20c   :  { %2057 = vtanh.f32 %v1078_v1 }
 0x214   :  { %v2054_v2 = vpop.eup %2053 }
 0x215   :  { %v2056_v9 = vpop.eup %2055  ;;  %v1087_v10 = vadd.f32 1.0, %v2054_v2 }
 0x216   :  { %v1088_v46 = vadd.f32 1.0, %v2056_v9  ;;  %v2058_v13 = vpop.eup %2057 }
 0x218   :  { %2059 = vrcp.f32 %v1088_v46 }
 0x219   :  { %2061 = vrcp.f32 %v1087_v10 }
 0x222   :  { %v2060_v14 = vpop.eup %2059 }
 0x223   :  { %v2062_v7 = vpop.eup %2061  ;;  %v1094_v21 = vsel %vm959_vm13, %v2058_v13, %v2060_v14 }
 0x224   :  { %v1096_v12 = vmul.f32 %v2062_v7, %v1094_v21  ;;  %v1095_v47 = vmul.f32 0.0, %v2062_v7 }
 0x226   :  { %1098 = vrot.lane.b32.xlu0 %v1096_v12, %s2294_s7 }
 0x298   :  { %v1099_v15 = vpop.permute.xlu0 %1098 }
 0x299   :  { %v1101_v16 = vadd.f32 %v1099_v15, %v1095_v47 }
 0x29b   :  { %2063 = vtanh.f32 %v1101_v16 }
 0x2a5   :  { %v2064_v44 = vpop.eup %2063 }
 0x2a6   :  { %v1103_v45 = vmul.f32 %v2064_v44, %v1094_v21 }
 0x2a8   :  { %v1106_v57 = vpack.c.bf16 %v1103_v45, %v1103_v45 }
 0x2aa   :  { %1108 = vrot.lane.b32.xlu1 %v1106_v57, %s2294_s7 }
 0x31c   :  { %v1109_v41 = vpop.permute.xlu1 %1108 }
 0x31d   :  { %1926 = vmatmul.mubr.msk.bf16.vlgmr.msra.gmra.mrb[32].mxu1 %vm1032_vm5, %v1109_v41 }
 0x31e   :  { %1268 = vmatpush1.bf16.msra.mxu1 %v2542_v32  ;;  %1299 = vmatprep.mubr.bf16.mxu1 %v2297_v0 }
 0x31f   :  { %1269 = vmatprep.subr.bf16.mxu1 %v2547_v33 }
 0x322   :  { %1270 = vmatpush1.bf16.msra.mxu1 %v2554_v34 }
 0x323   :  { %1271 = vmatprep.subr.bf16.mxu1 %v2561_v35 }
 0x326   :  { %1272 = vmatpush1.bf16.msra.mxu1 %v2567_v36 }
 0x327   :  { %1273 = vmatprep.subr.bf16.mxu1 %v2573_v37 }
 0x32a   :  { %1274 = vmatpush1.bf16.msra.mxu1 %v2579_v38 }
 0x32b   :  { %1421 = vmatprep.subr.bf16.mxu1 %v2530_v29 }
 0x3f0   :  { %v1147_v51 = vpop.f32.mrb[32].mxu1 }
 0x3f1   :  { %v1154_v54 = vadd.f32 %v1147_v51, %v1104_v26  ;;  %v1149_v1 = vpop.f32.mrb[33].mxu1 }
 0x3f2   :  { %v1155_v60 = vadd.f32 %v1149_v1, %v1105_v28  ;;  %v1151_v62 = vpop.f32.mrb[34].mxu1 }
 0x3f3   :  { %v1927_v2 = vmul.f32 -1.442695, %v1154_v54  ;;  %v1152_v9 = vpop.f32.mrb[35].mxu1 }
 0x3f4   :  { %v1928_v10 = vmul.f32 -1.442695, %v1155_v60 }
 0x3f5   :  { %2065 = vpow2.f32 %v1927_v2 }
 0x3f6   :  { %2067 = vpow2.f32 %v1928_v10 }
 0x3f7   :  { %2069 = vtanh.f32 %v1155_v60 }
 0x3ff   :  { %v2066_v46 = vpop.eup %2065 }
 0x400   :  { %v2068_v13 = vpop.eup %2067  ;;  %v1164_v14 = vadd.f32 1.0, %v2066_v46 }
 0x401   :  { %v1165_v7 = vadd.f32 1.0, %v2068_v13  ;;  %v2070_v21 = vpop.eup %2069 }
 0x403   :  { %2071 = vrcp.f32 %v1165_v7 }
 0x404   :  { %2073 = vrcp.f32 %v1164_v14 }
 0x40d   :  { %v2072_v12 = vpop.eup %2071 }
 0x40e   :  { %v2074_v47 = vpop.eup %2073  ;;  %v1171_v26 = vsel %vm959_vm13, %v2070_v21, %v2072_v12 }
 0x40f   :  { %v1173_v28 = vmul.f32 %v2074_v47, %v1171_v26  ;;  %v1172_v15 = vmul.f32 %v2074_v47, %v1101_v16 }
 0x411   :  { %1175 = vrot.lane.b32.xlu0 %v1173_v28, %s2294_s7 }
 0x483   :  { %v1176_v44 = vpop.permute.xlu0 %1175 }
 0x484   :  { %v1178_v45 = vadd.f32 %v1176_v44, %v1172_v15 }
 0x486   :  { %2075 = vtanh.f32 %v1178_v45 }
 0x490   :  { %v2076_v57 = vpop.eup %2075 }
 0x491   :  { %v1180_v41 = vmul.f32 %v2076_v57, %v1171_v26 }
 0x493   :  { %v1183_v51 = vpack.c.bf16 %v1180_v41, %v1180_v41 }
 0x495   :  { %1185 = vrot.lane.b32.xlu1 %v1183_v51, %s2294_s7 }
 0x507   :  { %v1186_v54 = vpop.permute.xlu1 %1185 }
 0x508   :  { %1929 = vmatmul.mubr.msk.bf16.vlgmr.msra.gmra.mrb[36].mxu0 %vm1032_vm5, %v1186_v54 }
 0x509   :  { %1345 = vmatpush1.bf16.msra.mxu0 %v2542_v32  ;;  %1376 = vmatprep.mubr.bf16.mxu0 %v2297_v0 }
 0x50a   :  { %1346 = vmatprep.subr.bf16.mxu0 %v2547_v33 }
 0x50d   :  { %1347 = vmatpush1.bf16.msra.mxu0 %v2554_v34 }
 0x50e   :  { %1348 = vmatprep.subr.bf16.mxu0 %v2561_v35 }
 0x511   :  { %1349 = vmatpush1.bf16.msra.mxu0 %v2567_v36 }
 0x512   :  { %1350 = vmatprep.subr.bf16.mxu0 %v2573_v37 }
 0x515   :  { %1351 = vmatpush1.bf16.msra.mxu0 %v2579_v38 }
 0x516   :  { %1498 = vmatprep.subr.bf16.mxu0 %v2530_v29 }
 0x5db   :  { %v1224_v16 = vpop.f32.mrb[36].mxu0 }
 0x5dc   :  { %v1231_v1 = vadd.f32 %v1224_v16, %v1181_v39  ;;  %v1226_v60 = vpop.f32.mrb[37].mxu0 }
 0x5dd   :  { %v1232_v62 = vadd.f32 %v1226_v60, %v1182_v24  ;;  %v1228_v2 = vpop.f32.mrb[38].mxu0 }
 0x5de   :  { %v1930_v9 = vmul.f32 -1.442695, %v1231_v1  ;;  %v1229_v10 = vpop.f32.mrb[39].mxu0 }
 0x5df   :  { %v1931_v46 = vmul.f32 -1.442695, %v1232_v62 }
 0x5e0   :  { %2077 = vpow2.f32 %v1930_v9 }
 0x5e1   :  { %2079 = vpow2.f32 %v1931_v46 }
 0x5e2   :  { %2081 = vtanh.f32 %v1232_v62 }
 0x5ea   :  { %v2078_v13 = vpop.eup %2077 }
 0x5eb   :  { %v2080_v14 = vpop.eup %2079  ;;  %v1241_v7 = vadd.f32 1.0, %v2078_v13 }
 0x5ec   :  { %v1242_v21 = vadd.f32 1.0, %v2080_v14  ;;  %v2082_v39 = vpop.eup %2081 }
 0x5ee   :  { %2083 = vrcp.f32 %v1242_v21 }
 0x5ef   :  { %2085 = vrcp.f32 %v1241_v7 }
 0x5f8   :  { %v2084_v12 = vpop.eup %2083 }
 0x5f9   :  { %v2086_v47 = vpop.eup %2085  ;;  %v1248_v26 = vsel %vm959_vm13, %v2082_v39, %v2084_v12 }
 0x5fa   :  { %v1250_v24 = vmul.f32 %v2086_v47, %v1248_v26  ;;  %v1249_v28 = vmul.f32 %v2086_v47, %v1178_v45 }
 0x5fc   :  { %1252 = vrot.lane.b32.xlu0 %v1250_v24, %s2294_s7 }
 0x66e   :  { %v1253_v15 = vpop.permute.xlu0 %1252 }
 0x66f   :  { %v1255_v44 = vadd.f32 %v1253_v15, %v1249_v28 }
 0x671   :  { %2087 = vtanh.f32 %v1255_v44 }
 0x67b   :  { %v2088_v57 = vpop.eup %2087 }
 0x67c   :  { %v1257_v41 = vmul.f32 %v2088_v57, %v1248_v26 }
 0x67e   :  { %v1260_v51 = vpack.c.bf16 %v1257_v41, %v1257_v41 }
 0x680   :  { %1262 = vrot.lane.b32.xlu1 %v1260_v51, %s2294_s7 }
 0x6f2   :  { %v1263_v54 = vpop.permute.xlu1 %1262 }
 0x6f3   :  { %1932 = vmatmul.mubr.msk.bf16.vlgmr.msra.gmra.mrb[36].mxu1 %vm1032_vm5, %v1263_v54 }
 0x6f4   :  { %1422 = vmatpush1.bf16.msra.mxu1 %v2542_v32  ;;  %1453 = vmatprep.mubr.bf16.mxu1 %v2297_v0 }
 0x6f5   :  { %1423 = vmatprep.subr.bf16.mxu1 %v2547_v33 }
 0x6f8   :  { %1424 = vmatpush1.bf16.msra.mxu1 %v2554_v34 }
 0x6f9   :  { %1425 = vmatprep.subr.bf16.mxu1 %v2561_v35 }
 0x6fc   :  { %1426 = vmatpush1.bf16.msra.mxu1 %v2567_v36 }
 0x6fd   :  { %1427 = vmatprep.subr.bf16.mxu1 %v2573_v37 }
 0x700   :  { %1428 = vmatpush1.bf16.msra.mxu1 %v2579_v38 }
 0x701   :  { %1575 = vmatprep.subr.bf16.mxu1 %v2530_v29 }
 0x7c6   :  { %v1301_v45 = vpop.f32.mrb[36].mxu1 }
 0x7c7   :  { %v1308_v16 = vadd.f32 %v1301_v45, %v1258_v19  ;;  %v1303_v1 = vpop.f32.mrb[37].mxu1 }
 0x7c8   :  { %v1309_v60 = vadd.f32 %v1303_v1, %v1259_v55  ;;  %v1305_v62 = vpop.f32.mrb[38].mxu1 }
 0x7c9   :  { %v1933_v2 = vmul.f32 -1.442695, %v1308_v16  ;;  %v1306_v9 = vpop.f32.mrb[39].mxu1 }
 0x7ca   :  { %v1934_v10 = vmul.f32 -1.442695, %v1309_v60 }
 0x7cb   :  { %2089 = vpow2.f32 %v1933_v2 }
 0x7cc   :  { %2091 = vpow2.f32 %v1934_v10 }
 0x7cd   :  { %2093 = vtanh.f32 %v1309_v60 }
 0x7d5   :  { %v2090_v29 = vpop.eup %2089 }
 0x7d6   :  { %v2092_v46 = vpop.eup %2091  ;;  %v1318_v13 = vadd.f32 1.0, %v2090_v29 }
 0x7d7   :  { %v1319_v14 = vadd.f32 1.0, %v2092_v46  ;;  %v2094_v19 = vpop.eup %2093 }
 0x7d9   :  { %2095 = vrcp.f32 %v1319_v14 }
 0x7da   :  { %2097 = vrcp.f32 %v1318_v13 }
 0x7e3   :  { %v2096_v7 = vpop.eup %2095 }
 0x7e4   :  { %v2098_v21 = vpop.eup %2097  ;;  %v1325_v39 = vsel %vm959_vm13, %v2094_v19, %v2096_v7 }
 0x7e5   :  { %v1327_v55 = vmul.f32 %v2098_v21, %v1325_v39  ;;  %v1326_v12 = vmul.f32 %v2098_v21, %v1255_v44 }
 0x7e7   :  { %1329 = vrot.lane.b32.xlu0 %v1327_v55, %s2294_s7 }
 0x859   :  { %v1330_v47 = vpop.permute.xlu0 %1329 }
 0x85a   :  { %v1332_v26 = vadd.f32 %v1330_v47, %v1326_v12 }
 0x85c   :  { %2099 = vtanh.f32 %v1332_v26 }
 0x866   :  { %v2100_v24 = vpop.eup %2099 }
 0x867   :  { %v1334_v28 = vmul.f32 %v2100_v24, %v1325_v39 }
 0x869   :  { %v1337_v15 = vpack.c.bf16 %v1334_v28, %v1334_v28 }
 0x86b   :  { %1339 = vrot.lane.b32.xlu1 %v1337_v15, %s2294_s7 }
 0x8dd   :  { %v1340_v57 = vpop.permute.xlu1 %1339 }
 0x8de   :  { %1935 = vmatmul.mubr.msk.bf16.vlgmr.msra.gmra.mrb[40].mxu0 %vm1032_vm5, %v1340_v57 }
 0x8df   :  { %1499 = vmatpush1.bf16.msra.mxu0 %v2542_v32  ;;  %1530 = vmatprep.mubr.bf16.mxu0 %v2297_v0 }
 0x8e0   :  { %1500 = vmatprep.subr.bf16.mxu0 %v2547_v33 }
 0x8e3   :  { %1501 = vmatpush1.bf16.msra.mxu0 %v2554_v34 }
 0x8e4   :  { %1502 = vmatprep.subr.bf16.mxu0 %v2561_v35 }
 0x8e7   :  { %1503 = vmatpush1.bf16.msra.mxu0 %v2567_v36 }
 0x8e8   :  { %1504 = vmatprep.subr.bf16.mxu0 %v2573_v37 }
 0x8eb   :  { %1505 = vmatpush1.bf16.msra.mxu0 %v2579_v38 }
 0x8ec   :  { %1972 = vmatprep.subr.bf16.mxu0 %v2305_v42 }
 0x9b1   :  { %v1378_v44 = vpop.f32.mrb[40].mxu0 }
 0x9b2   :  { %v1385_v41 = vadd.f32 %v1378_v44, %v1335_v20  ;;  %v1380_v51 = vpop.f32.mrb[41].mxu0 }
 0x9b3   :  { %v1386_v54 = vadd.f32 %v1380_v51, %v1336_v56  ;;  %v1382_v45 = vpop.f32.mrb[42].mxu0 }
 0x9b4   :  { %v1936_v16 = vmul.f32 -1.442695, %v1385_v41  ;;  %v1383_v1 = vpop.f32.mrb[43].mxu0 }
 0x9b5   :  { %v1937_v60 = vmul.f32 -1.442695, %v1386_v54 }
 0x9b6   :  { %2101 = vpow2.f32 %v1936_v16 }
 0x9b7   :  { %2103 = vpow2.f32 %v1937_v60 }
 0x9b8   :  { %2105 = vtanh.f32 %v1386_v54 }
 0x9c0   :  { %v2102_v62 = vpop.eup %2101 }
 0x9c1   :  { %v2104_v2 = vpop.eup %2103  ;;  %v1395_v9 = vadd.f32 1.0, %v2102_v62 }
 0x9c2   :  { %v1396_v10 = vadd.f32 1.0, %v2104_v2  ;;  %v2106_v11 = vpop.eup %2105 }
 0x9c4   :  { %2107 = vrcp.f32 %v1396_v10 }
 0x9c5   :  { %2109 = vrcp.f32 %v1395_v9 }
 0x9ce   :  { %v2108_v50 = vpop.eup %2107 }
 0x9cf   :  { %v2110_v20 = vpop.eup %2109  ;;  %v1402_v31 = vsel %vm959_vm13, %v2106_v11, %v2108_v50 }
 0x9d0   :  { %v1404_v53 = vmul.f32 %v2110_v20, %v1402_v31  ;;  %v1403_v56 = vmul.f32 %v2110_v20, %v1332_v26 }
 0x9d2   :  { %1406 = vrot.lane.b32.xlu0 %v1404_v53, %s2294_s7 }
 0xa44   :  { %v1407_v29 = vpop.permute.xlu0 %1406 }
 0xa45   :  { %v1409_v46 = vadd.f32 %v1407_v29, %v1403_v56 }
 0xa47   :  { %2111 = vtanh.f32 %v1409_v46 }
 0xa51   :  { %v2112_v13 = vpop.eup %2111 }
 0xa52   :  { %v1411_v14 = vmul.f32 %v2112_v13, %v1402_v31 }
 0xa54   :  { %v1414_v19 = vpack.c.bf16 %v1411_v14, %v1411_v14 }
 0xa56   :  { %1416 = vrot.lane.b32.xlu1 %v1414_v19, %s2294_s7 }
 0xac8   :  { %v1417_v7 = vpop.permute.xlu1 %1416 }
 0xac9   :  { %1938 = vmatmul.mubr.msk.bf16.vlgmr.msra.gmra.mrb[40].mxu1 %vm1032_vm5, %v1417_v7 }
 0xaca   :  { %1576 = vmatpush1.bf16.msra.mxu1 %v2542_v32  ;;  %1607 = vmatprep.mubr.bf16.mxu1 %v2297_v0 }
 0xacb   :  { %1577 = vmatprep.subr.bf16.mxu1 %v2547_v33 }
 0xace   :  { %1578 = vmatpush1.bf16.msra.mxu1 %v2554_v34 }
 0xacf   :  { %1579 = vmatprep.subr.bf16.mxu1 %v2561_v35 }
 0xad2   :  { %1580 = vmatpush1.bf16.msra.mxu1 %v2567_v36 }
 0xad3   :  { %1581 = vmatprep.subr.bf16.mxu1 %v2573_v37 }
 0xad6   :  { %1582 = vmatpush1.bf16.msra.mxu1 %v2579_v38 }
 0xad7   :  { %1984 = vmatprep.subr.bf16.mxu1 %v2305_v42 }
 0xb9c   :  { %v1455_v21 = vpop.f32.mrb[40].mxu1 }
 0xb9d   :  { %v1462_v0 = vadd.f32 %v1455_v21, %v1412_v23  ;;  %v1457_v32 = vpop.f32.mrb[41].mxu1 }
 0xb9e   :  { %v1463_v33 = vadd.f32 %v1457_v32, %v1413_v6  ;;  %v1459_v34 = vpop.f32.mrb[42].mxu1 }
 0xb9f   :  { %v1939_v35 = vmul.f32 -1.442695, %v1462_v0  ;;  %v1460_v36 = vpop.f32.mrb[43].mxu1 }
 0xba0   :  { %v1940_v37 = vmul.f32 -1.442695, %v1463_v33 }
 0xba1   :  { %2113 = vpow2.f32 %v1939_v35  ;;  %v2048_v35 = vld [vmem:[%s3010_s6 + $0x18] sm:$0xff]  }
 0xba2   :  { %2115 = vpow2.f32 %v1940_v37 }
 0xba3   :  { %2117 = vtanh.f32 %v1463_v33 }
 0xbab   :  { %v2114_v38 = vpop.eup %2113 }
 0xbac   :  { %v2116_v39 = vpop.eup %2115  ;;  %v1472_v55 = vadd.f32 1.0, %v2114_v38 }
 0xbad   :  { %v1473_v12 = vadd.f32 1.0, %v2116_v39  ;;  %v2118_v17 = vpop.eup %2117  ;;  %v2049_v39 = vld [vmem:[%s3012_s8] sm:$0xff]  }
 0xbaf   :  { %2119 = vrcp.f32 %v1473_v12 }
 0xbb0   :  { %2121 = vrcp.f32 %v1472_v55 }
 0xbb9   :  { %v2120_v63 = vpop.eup %2119 }
 0xbba   :  { %v2122_v23 = vpop.eup %2121  ;;  %v1479_v18 = vsel %vm959_vm13, %v2118_v17, %v2120_v63 }
 0xbbb   :  { %v1481_v3 = vmul.f32 %v2122_v23, %v1479_v18  ;;  %v1480_v6 = vmul.f32 %v2122_v23, %v1409_v46  ;;  %v2050_v23 = vld [vmem:[%s3012_s8 + $0x8] sm:$0xff]   ;;  %s2307_s8 = smov 32  }
 0xbbd   :  { %1483 = vrot.lane.b32.xlu0 %v1481_v3, %s2294_s7 }
 0xc2f   :  { %v1484_v47 = vpop.permute.xlu0 %1483 }
 0xc30   :  { %v1486_v26 = vadd.f32 %v1484_v47, %v1480_v6 }
 0xc32   :  { %2123 = vtanh.f32 %v1486_v26 }
 0xc3c   :  { %v2124_v24 = vpop.eup %2123 }
 0xc3d   :  { %v1488_v28 = vmul.f32 %v2124_v24, %v1479_v18  ;;  %v1947_v18 = vld [vmem:[#allocation6] ss:$0 sm:$0xff] }
 0xc3f   :  { %v1491_v15 = vpack.c.bf16 %v1488_v28, %v1488_v28 }
 0xc41   :  { %1493 = vrot.lane.b32.xlu1 %v1491_v15, %s2294_s7  ;;  %v2051_v15 = vld [vmem:[#allocation9] sm:$0xff]  }
 0xcb3   :  { %v1494_v57 = vpop.permute.xlu1 %1493 }
 0xcb4   :  { %1941 = vmatmul.mubr.msk.bf16.vlgmr.msra.gmra.mrb[44].mxu0 %vm1032_vm5, %v1494_v57 }
 0xcb5   :  { %1980 = vmatprep.mubr.msk.bf16.mxu0 %vm2306_vm6, %v2305_v42 }
 0xd87   :  { %v1532_v44 = vpop.f32.mrb[44].mxu0 }
 0xd88   :  { %v1539_v41 = vadd.f32 %v1532_v44, %v1489_v27  ;;  %v1534_v51 = vpop.f32.mrb[45].mxu0  ;;  %v2052_v44 = vld [vmem:[#allocation9 + $0x8] sm:$0xff]  }
 0xd89   :  { %v1540_v54 = vadd.f32 %v1534_v51, %v1490_v30  ;;  %v1536_v45 = vpop.f32.mrb[46].mxu0 }
 0xd8a   :  { %v1942_v16 = vmul.f32 -1.442695, %v1539_v41  ;;  %v1537_v1 = vpop.f32.mrb[47].mxu0  ;;  %v1953_v41 = vld [vmem:[#allocation7] ss:$0 sm:$0xff] }
 0xd8b   :  { %v1943_v60 = vmul.f32 -1.442695, %v1540_v54 }
 0xd8c   :  { %2125 = vpow2.f32 %v1942_v16 }
 0xd8d   :  { %2127 = vpow2.f32 %v1943_v60 }
 0xd8e   :  { %2129 = vtanh.f32 %v1540_v54 }
 0xd96   :  { %v2126_v62 = vpop.eup %2125 }
 0xd97   :  { %v2128_v2 = vpop.eup %2127  ;;  %v1549_v9 = vadd.f32 1.0, %v2126_v62 }
 0xd98   :  { %v1550_v10 = vadd.f32 1.0, %v2128_v2  ;;  %v2130_v5 = vpop.eup %2129  ;;  %v1957_v2 = vld [vmem:[#allocation10] ss:$0 sm:$0xff] }
 0xd9a   :  { %2131 = vrcp.f32 %v1550_v10 }
 0xd9b   :  { %2133 = vrcp.f32 %v1549_v9 }
 0xda4   :  { %v2132_v8 = vpop.eup %2131 }
 0xda5   :  { %v2134_v27 = vpop.eup %2133  ;;  %v1556_v4 = vsel %vm959_vm13, %v2130_v5, %v2132_v8 }
 0xda6   :  { %v1558_v22 = vmul.f32 %v2134_v27, %v1556_v4  ;;  %v1557_v30 = vmul.f32 %v2134_v27, %v1486_v26 }
 0xda8   :  { %1560 = vrot.lane.b32.xlu0 %v1558_v22, %s2294_s7 }
 0xe1a   :  { %v1561_v11 = vpop.permute.xlu0 %1560 }
 0xe1b   :  { %v1563_v50 = vadd.f32 %v1561_v11, %v1557_v30 }
 0xe1d   :  { %2135 = vtanh.f32 %v1563_v50 }
 0xe27   :  { %v2136_v20 = vpop.eup %2135 }
 0xe28   :  { %v1565_v31 = vmul.f32 %v2136_v20, %v1556_v4 }
 0xe2a   :  { %v1568_v53 = vpack.c.bf16 %v1565_v31, %v1565_v31 }
 0xe2c   :  { %1570 = vrot.lane.b32.xlu1 %v1568_v53, %s2294_s7 }
 0xe9e   :  { %v1571_v56 = vpop.permute.xlu1 %1570 }
 0xe9f   :  { %1944 = vmatmul.mubr.msk.bf16.vlgmr.msra.gmra.mrb[44].mxu1 %vm1032_vm5, %v1571_v56 }
 0xea0   :  { %1988 = vmatprep.mubr.msk.bf16.mxu1 %vm2306_vm6, %v2305_v42  ;;  %1985 = vmatpush3.bf16.msra.mxu1 %v2049_v39 }
 0xea1   :  { %1986 = vmatprep.subr.bf16.mxu1 %v2305_v42 }
 0xea4   :  { %1987 = vmatpush3.bf16.msra.mxu1 %v2050_v23 }
 0xea5   :  { %1992 = vmatprep.subr.bf16.mxu1 %v2305_v42 }
 0xf72   :  { %v1609_v29 = vpop.f32.mrb[44].mxu1 }
 0xf73   :  { %v1616_v46 = vadd.f32 %v1609_v29, %v1566_v43  ;;  %v1611_v13 = vpop.f32.mrb[45].mxu1  ;;  %v2045_v43 = vld [vmem:[%s3010_s6] sm:$0xff]  }
 0xf74   :  { %v1617_v14 = vadd.f32 %v1611_v13, %v1567_v61  ;;  %v1613_v19 = vpop.f32.mrb[46].mxu1  ;;  %1973 = vmatpush3.bf16.msra.mxu0 %v2045_v43  ;;  %v2047_v61 = vld [vmem:[%s3010_s6 + $0x10] sm:$0xff]  }
 0xf75   :  { %v1945_v7 = vmul.f32 -1.442695, %v1616_v46  ;;  %v1614_v21 = vpop.f32.mrb[47].mxu1  ;;  %1974 = vmatprep.subr.bf16.mxu0 %v2305_v42 }
 0xf76   :  { %v1946_v0 = vmul.f32 -1.442695, %v1617_v14 }
 0xf77   :  { %2137 = vpow2.f32 %v1945_v7 }
 0xf78   :  { %2139 = vpow2.f32 %v1946_v0  ;;  %1975 = vmatpush3.bf16.msra.mxu0 %v2046_v25 }
 0xf79   :  { %2141 = vtanh.f32 %v1617_v14  ;;  %1976 = vmatprep.subr.bf16.mxu0 %v2305_v42 }
 0xf7c   :  { %1977 = vmatpush3.bf16.msra.mxu0 %v2047_v61 }
 0xf7d   :  { %1978 = vmatprep.subr.bf16.mxu0 %v2305_v42 }
 0xf80   :  { %1979 = vmatpush3.bf16.msra.mxu0 %v2048_v35 }
 0xf81   :  { %v2138_v32 = vpop.eup %2137 }
 0xf82   :  { %v2140_v33 = vpop.eup %2139  ;;  %v1626_v49 = vadd.f32 1.0, %v2138_v32 }
 0xf83   :  { %v1627_v34 = vadd.f32 1.0, %v2140_v33  ;;  %v2142_v48 = vpop.eup %2141 }
 0xf85   :  { %2143 = vrcp.f32 %v1627_v34 }
 0xf86   :  { %2145 = vrcp.f32 %v1626_v49 }
 0xf8f   :  { %v2144_v40 = vpop.eup %2143 }
 0xf90   :  { %v2146_v52 = vpop.eup %2145  ;;  %v1633_v58 = vsel %vm959_vm13, %v2142_v48, %v2144_v40 }
 0xf91   :  { %v1635_v59 = vmul.f32 %v2146_v52, %v1633_v58  ;;  %v1634_v36 = vmul.f32 %v2146_v52, %v1563_v50 }
 0xf93   :  { %1637 = vrot.lane.b32.xlu0 %v1635_v59, %s2294_s7 }
0x1005   :  { %v1638_v37 = vpop.permute.xlu0 %1637 }
0x1006   :  { %v1640_v38 = vadd.f32 %v1638_v37, %v1634_v36 }
0x1008   :  { %2147 = vtanh.f32 %v1640_v38 }
0x1012   :  { %v2148_v55 = vpop.eup %2147 }
0x1013   :  { %v1642_v12 = vmul.f32 %v2148_v55, %v1633_v58 }
0x1015   :  { %v1643_v17 = vpack.c.bf16 %v1642_v12, %v1642_v12 }
0x1017   :  { %1660 = vrot.lane.b32.xlu1 %v1643_v17, %s2294_s7 }
0x1089   :  { %v1661_v63 = vpop.permute.xlu1 %1660 }
0x108a   :  { %1981 = vmatmul.mubr.msk.bf16.vlgmr.msra.gmra.mrb[48].mxu0 %vm1032_vm5, %v1661_v63 }
0x115d   :  { %v1723_v3 = vpop.f32.mrb[48].mxu0 }
0x115e   :  { %v1724_v6 = vadd.f32 %v1947_v18, %v1723_v3  ;;  %v1982_v47 = vpop.f32.mrb[49].mxu0 }
0x115f   :  { %v1726_v26 = vpop.f32.mrb[50].mxu0 }
0x1160   :  { %v1729_v24 = vmax.f32 %v1724_v6, 0.0  ;;  %v1983_v28 = vpop.f32.mrb[51].mxu0 }
0x1162   :  { %v1730_v57 = vpack.c.bf16 %v1729_v24, %v1729_v24 }
0x1164   :  { %1989 = vmatmul.mubr.msk.bf16.vlgmr.msra.gmra.mrb[48].mxu1 %vm1754_vm7, %v1730_v57 }
0x1165   :  { %1993 = vmatpush3.bf16.msra.mxu1 %v2051_v15  ;;  %1996 = vmatprep.mubr.msk.bf16.mxu1 %vm2306_vm6, %v2305_v42 }
0x1166   :  { %1994 = vmatprep.subr.bf16.mxu1 %v2305_v42 }
0x1169   :  { %1995 = vmatpush3.bf16.msra.mxu1 %v2052_v44 }
0x1237   :  { %v1792_v51 = vpop.f32.mrb[48].mxu1 }
0x1238   :  { %v1793_v54 = vadd.f32 %v1953_v41, %v1792_v51  ;;  %v1990_v45 = vpop.f32.mrb[49].mxu1 }
0x1239   :  { %v1795_v16 = vpop.f32.mrb[50].mxu1 }
0x123a   :  { %v1798_v1 = vmax.f32 %v1793_v54, 0.0  ;;  %v1991_v60 = vpop.f32.mrb[51].mxu1 }
0x123c   :  { %v1799_v62 = vpack.c.bf16 %v1798_v1, %v1798_v1 }
0x123e   :  { %1997 = vmatmul.mubr.msk.bf16.vlgmr.msra.gmra.mrb[52].mxu1 %vm1754_vm7, %v1799_v62 }
0x1311   :  { %v1860_v9 = vpop.f32.mrb[52].mxu1 }
0x1312   :  { %v1861_v10 = vadd.f32 %v1957_v2, %v1860_v9  ;;  %v1998_v5 = vpop.f32.mrb[53].mxu1 }
0x1313   :  { %v1863_v8 = vpop.f32.mrb[54].mxu1 }
0x1314   :  { %1867 = vrot.lane.b32.xlu0 %v1861_v10, %s2307_s8  ;;  %v1999_v42 = vpop.f32.mrb[55].mxu1 }
0x1386   :  { %v1868_v27 = vpop.permute.xlu0 %1867 }
0x1387   :  { %v1870_v4 = vsel %vm1754_vm7, %v1798_v1, %v1868_v27 }
0x1388   :  { %1872 = vst.msk [vmem:[%s3016_s12] sm:$0x3] %vm1871_vm8, %v1870_v4 }
0x1389   :  { %1877 = vsyncpa [#allocation3], 1 }
0x138a   :  { %1878 = vsyncpa [#allocation5], 1 }
0x138b   :  { %1879 = vsyncpa [#allocation8], 1 }
0x138c   :  { %1880 = vsyncpa [#allocation11], 1 }

</bundles_post_ra>
